<compile_context>
chip_gen: v7x
topology: tpu7x:2x2x1
jax: 0.10.0
libtpu: 0.0.40
codegen_flags: <defaults>
</compile_context>

<pallas_src>
import functools
import numpy as np
import jax
import jax.numpy as jnp
from jax import lax
from jax.experimental import pallas as pl
from jax.experimental.pallas import tpu as pltpu

EPS = 1e-6


def _num_groups(c: int) -> int:
    if c % 32 == 0:
        return 32
    if c % 24 == 0:
        return 24
    raise NotImplementedError(f"GroupNorm needs C % 32 == 0 or C % 24 == 0, got {c}")


# --------------------------- stage kernel -----------------------------------

def _stage_kernel(*refs, band_rows, W, add_residual, has_proj):
    """One ResnetBlock stage on a (band_rows + 2-row halo) slab.

    GN (precomputed scale/shift) -> swish -> 3x3 conv (+ optional residual).
    Block shapes: x (1,1,(R+2)*W,Cin), residual (1,1,R*W,Cin), out (1,1,R*W,Cout).
    """
    if add_residual and has_proj:
        (x_ref, sc_ref, sh_ref, w_ref, b_ref,
         r_ref, ws_ref, bs_ref, o_ref) = refs
    elif add_residual:
        x_ref, sc_ref, sh_ref, w_ref, b_ref, r_ref, o_ref = refs
    else:
        x_ref, sc_ref, sh_ref, w_ref, b_ref, o_ref = refs

    R = band_rows
    E = (R + 2) * W            # band rows + 1-row halo on each side
    RW = R * W

    # Shortcut path first: independent of the GN/swish chain, so the LLO
    # scheduler can overlap this MXU work with the VPU/EUP work below.
    if add_residual:
        res = r_ref[0, 0]                                            # (RW, Cin) f32
        if has_proj:
            sc_acc = jnp.dot(res.astype(jnp.bfloat16), ws_ref[...],
                             preferred_element_type=jnp.float32) + bs_ref[...]
        else:
            sc_acc = res                                             # identity shortcut

    xe = x_ref[0, 0]                                                 # (E, Cin) f32

    # GroupNorm via precomputed per-(batch, channel) scale/shift, then swish.
    h = xe * sc_ref[0] + sh_ref[0]
    h = h * jax.nn.sigmoid(h)

    # Zero halo rows that fall outside the image (top halo of band 0, bottom
    # halo of the last band).  The wrapper stores zeros there, but GN-shift +
    # swish would make them nonzero again.  All selects in f32.
    flat = lax.broadcasted_iota(jnp.int32, (E, 1), 0)
    bi = pl.program_id(1)
    top_pad = jnp.logical_and(flat < W, bi == 0)
    bot_pad = jnp.logical_and(flat >= (R + 1) * W,
                              bi == pl.num_programs(1) - 1)
    h = jnp.where(jnp.logical_or(top_pad, bot_pad), 0.0, h)

    # Horizontal +-1 pixel taps: XLU roll + zero the row-wrap positions (still
    # f32), then fold the 3 kx taps into the contraction dim (K = 3*Cin).
    xcol = flat % W
    left = jnp.where(xcol == 0, 0.0, pltpu.roll(h, 1, axis=0))           # (y, x-1)
    right = jnp.where(xcol == W - 1, 0.0, pltpu.roll(h, E - 1, axis=0))  # (y, x+1)
    patch = jnp.concatenate([left.astype(jnp.bfloat16),
                             h.astype(jnp.bfloat16),
                             right.astype(jnp.bfloat16)], axis=-1)       # (E, 3*Cin)

    # ky taps = static sublane slices of the halo-extended patch: output band
    # row r reads extended rows r, r+1, r+2 -> 3 deep MXU matmuls, f32 acc.
    acc = jnp.dot(patch[W:W + RW], w_ref[1], preferred_element_type=jnp.float32)
    acc += jnp.dot(patch[0:RW], w_ref[0], preferred_element_type=jnp.float32)
    acc += jnp.dot(patch[2 * W:2 * W + RW], w_ref[2],
                   preferred_element_type=jnp.float32)
    acc += b_ref[...]

    if add_residual:
        acc += sc_acc

    o_ref[0, 0] = acc.astype(o_ref.dtype)


# --------------------------- wrapper helpers --------------------------------

def _vmem_limit_bytes():
    """Per-generation scoped-VMEM limit: physical capacity minus headroom."""
    try:
        cap = int(pltpu.get_tpu_info().vmem_capacity_bytes)
    except Exception:
        cap = 128 * 1024 * 1024            # v5e/v6e physical; safe fallback
    # Leave headroom for Mosaic internal scratch / pipeline buffers:
    # v7x (64 MiB) -> 48 MiB, v5e/v6e (128 MiB) -> 112 MiB.
    return int(max(32 * 1024 * 1024,
                   min(cap - 16 * 1024 * 1024, 112 * 1024 * 1024)))


def _pick_band_rows(H, W, Cin, Cout, vmem_limit):
    """Largest divisor of H whose band-sized working set fits the VMEM budget."""
    # Rough bytes per band row: f32 input block (double-buffered) + f32 GN/swish
    # temporaries (h, left, right) + bf16 patch + f32 accumulator and output
    # block (double-buffered) + f32 residual band (double-buffered).
    per_row = W * (Cin * (8 + 12 + 6 + 8) + Cout * 12)
    budget = max(vmem_limit // 2, 8 * 1024 * 1024)
    r = int(max(1, min(H, budget // max(per_row, 1))))
    while H % r:
        r -= 1
    return r


def _gn_scale_shift(x_flat, gamma, beta, groups):
    """Exact f32 GroupNorm stats (single pass) folded into per-channel scale/shift.

    x_flat: (B, H*W, C) f32.  Returns scale, shift of shape (B, 1, C) f32 such
    that GN(x) = x * scale + shift.
    """
    B, HW, C = x_flat.shape
    cg = C // groups
    xg = x_flat.reshape(B, HW, groups, cg)
    mean = jnp.mean(xg, axis=(1, 3))                                   # (B, G)
    var = jnp.maximum(jnp.mean(jnp.square(xg), axis=(1, 3)) - jnp.square(mean), 0.0)
    rstd = lax.rsqrt(var + EPS)                                        # (B, G)
    scale_c = jnp.repeat(rstd, cg, axis=1) * gamma[None, :]            # (B, C)
    shift_c = beta[None, :] - jnp.repeat(mean, cg, axis=1) * scale_c   # (B, C)
    return scale_c.reshape(B, 1, C), shift_c.reshape(B, 1, C)


def _band_with_halo(img, band_rows):
    """(B, H, W, C) -> (B, NB, (band_rows+2)*W, C) with a zero 1-row halo."""
    B, H, W, C = img.shape
    NB = H // band_rows
    z = jnp.zeros((B, 1, W, C), img.dtype)
    padded = jnp.concatenate([z, img, z], axis=1)                      # (B, H+2, W, C)
    bands = [padded[:, i * band_rows: i * band_rows + band_rows + 2]
             for i in range(NB)]
    return jnp.stack(bands, axis=1).reshape(B, NB, (band_rows + 2) * W, C)


def _conv_stage(x_ext, scale, shift, w, b, *, band_rows, W, Cout,
                residual=None, ws=None, bs=None, vmem_limit):
    """pallas_call for one GN+swish+conv3x3 (+ residual) stage, grid (B, NB)."""
    B, NB, E, Cin = x_ext.shape
    RW = band_rows * W
    add_res = residual is not None
    has_proj = ws is not None

    args = [x_ext, scale, shift, w, b]
    in_specs = [
        pl.BlockSpec((1, 1, E, Cin), lambda bb, nn: (bb, nn, 0, 0)),
        pl.BlockSpec((1, 1, Cin), lambda bb, nn: (bb, 0, 0)),
        pl.BlockSpec((1, 1, Cin), lambda bb, nn: (bb, 0, 0)),
        # Grid-invariant params: the pipeline only re-DMAs when the block index
        # changes, so these are fetched once per kernel launch.
        pl.BlockSpec(w.shape, lambda bb, nn: (0, 0, 0)),
        pl.BlockSpec(b.shape, lambda bb, nn: (0, 0)),
    ]
    if add_res:
        args.append(residual)
        in_specs.append(pl.BlockSpec((1, 1, RW, residual.shape[-1]),
                                     lambda bb, nn: (bb, nn, 0, 0)))
        if has_proj:
            args += [ws, bs]
            in_specs += [pl.BlockSpec(ws.shape, lambda bb, nn: (0, 0)),
                         pl.BlockSpec(bs.shape, lambda bb, nn: (0, 0))]

    kernel = functools.partial(_stage_kernel, band_rows=band_rows, W=W,
                               add_residual=add_res, has_proj=has_proj)
    return pl.pallas_call(
        kernel,
        out_shape=jax.ShapeDtypeStruct((B, NB, RW, Cout), jnp.float32),
        grid=(B, NB),
        in_specs=in_specs,
        out_specs=pl.BlockSpec((1, 1, RW, Cout), lambda bb, nn: (bb, nn, 0, 0)),
        compiler_params=pltpu.CompilerParams(
            dimension_semantics=("parallel", "parallel"),
            vmem_limit_bytes=vmem_limit),
    )(*args)


# ------------------------------ wrapper --------------------------------------

def resnet_block_pallas(x_nchw, params, band_rows=None):
    """x_nchw: (B, Cin, H, W) float32.  Returns (B, Cout, H, W) float32."""
    x = jnp.transpose(x_nchw, (0, 2, 3, 1)).astype(jnp.float32)       # NCHW -> NHWC
    B, H, W, Cin = x.shape
    Cout = params["w1"].shape[0]                                      # OIHW
    g1, g2 = _num_groups(Cin), _num_groups(Cout)
    has_proj = (Cin != Cout)

    vmem_limit = _vmem_limit_bytes()
    if band_rows is None:
        band_rows = _pick_band_rows(H, W, Cin, Cout, vmem_limit)
    assert H % band_rows == 0, (H, band_rows)
    NB = H // band_rows
    RW = band_rows * W

    # Parameter plumbing: OIHW -> (kh, kw*Cin, Cout) bf16; biases as (1, C) f32.
    def pack_w(wp):
        cout, cin = wp.shape[0], wp.shape[1]
        return (jnp.transpose(wp, (2, 3, 1, 0))
                .reshape(3, 3 * cin, cout).astype(jnp.bfloat16))

    w1, w2 = pack_w(params["w1"]), pack_w(params["w2"])
    b1 = params["b1"].reshape(1, Cout).astype(jnp.float32)
    b2 = params["b2"].reshape(1, Cout).astype(jnp.float32)

    # Stage 1: GN1 stats (exact f32 XLA pass) -> banded GN+swish+conv1 kernel.
    s1, t1 = _gn_scale_shift(x.reshape(B, H * W, Cin),
                             params["gamma1"].astype(jnp.float32),
                             params["beta1"].astype(jnp.float32), g1)
    h1 = _conv_stage(_band_with_halo(x, band_rows), s1, t1, w1, b1,
                     band_rows=band_rows, W=W, Cout=Cout, vmem_limit=vmem_limit)
    h1 = h1.reshape(B, H, W, Cout)

    # Stage 2: GN2 stats -> banded GN+swish+conv2 + shortcut + residual add.
    s2, t2 = _gn_scale_shift(h1.reshape(B, H * W, Cout),
                             params["gamma2"].astype(jnp.float32),
                             params["beta2"].astype(jnp.float32), g2)
    if has_proj:
        ws = jnp.transpose(params["ws"].reshape(Cout, Cin), (1, 0)).astype(jnp.bfloat16)
        bs = params["bs"].reshape(1, Cout).astype(jnp.float32)
    else:
        ws = bs = None
    out = _conv_stage(_band_with_halo(h1, band_rows), s2, t2, w2, b2,
                      band_rows=band_rows, W=W, Cout=Cout,
                      residual=x.reshape(B, NB, RW, Cin), ws=ws, bs=bs,
                      vmem_limit=vmem_limit)
    out = out.reshape(B, H, W, Cout)
    return jnp.transpose(out, (0, 3, 1, 2))                           # -> NCHW


# ------------------------- reference (pure JAX, f32) -------------------------

def _gn_ref(x, gamma, beta, groups):                                  # x: NHWC
    B, H, W, C = x.shape
    xg = x.reshape(B, H, W, groups, C // groups)
    mean = xg.mean(axis=(1, 2, 4), keepdims=True)
    var = ((xg - mean) ** 2).mean(axis=(1, 2, 4), keepdims=True)
    xn = ((xg - mean) * lax.rsqrt(var + EPS)).reshape(B, H, W, C)
    return xn * gamma.reshape(1, 1, 1, C) + beta.reshape(1, 1, 1, C)


def _swish_ref(x):
    return x * jax.nn.sigmoid(x)


def resnet_block_ref(x_nchw, params):
    x = jnp.transpose(x_nchw, (0, 2, 3, 1))
    Cin = x.shape[-1]
    Cout = params["w1"].shape[0]
    dn = ("NHWC", "HWIO", "NHWC")
    w1 = jnp.transpose(params["w1"], (2, 3, 1, 0))
    w2 = jnp.transpose(params["w2"], (2, 3, 1, 0))

    h = _swish_ref(_gn_ref(x, params["gamma1"], params["beta1"], _num_groups(Cin)))
    h = lax.conv_general_dilated(h, w1, (1, 1), "SAME", dimension_numbers=dn)
    h = h + params["b1"].reshape(1, 1, 1, Cout)
    h = _swish_ref(_gn_ref(h, params["gamma2"], params["beta2"], _num_groups(Cout)))
    h = lax.conv_general_dilated(h, w2, (1, 1), "SAME", dimension_numbers=dn)
    h = h + params["b2"].reshape(1, 1, 1, Cout)
    if Cin != Cout:
        ws = params["ws"].reshape(Cout, Cin)
        sc = jnp.einsum("bhwc,oc->bhwo", x, ws) + params["bs"].reshape(1, 1, 1, Cout)
    else:
        sc = x
    return jnp.transpose(sc + h, (0, 3, 1, 2))


# ------------------------------ main -----------------------------------------

def _make_params(key, Cin, Cout, scale=0.1):
    ks = jax.random.split(key, 10)
    return {
        "gamma1": 1.0 + scale * jax.random.normal(ks[0], (Cin,), jnp.float32),
        "beta1":  scale * jax.random.normal(ks[1], (Cin,), jnp.float32),
        "w1":     scale * jax.random.normal(ks[2], (Cout, Cin, 3, 3), jnp.float32),
        "b1":     scale * jax.random.normal(ks[3], (Cout,), jnp.float32),
        "gamma2": 1.0 + scale * jax.random.normal(ks[4], (Cout,), jnp.float32),
        "beta2":  scale * jax.random.normal(ks[5], (Cout,), jnp.float32),
        "w2":     scale * jax.random.normal(ks[6], (Cout, Cout, 3, 3), jnp.float32),
        "b2":     scale * jax.random.normal(ks[7], (Cout,), jnp.float32),
        "ws":     scale * jax.random.normal(ks[8], (Cout, Cin, 1, 1), jnp.float32),
        "bs":     scale * jax.random.normal(ks[9], (Cout,), jnp.float32),
    }


def _run_case(kp, kx, B, Cin, Cout, H, W, band_rows=None):
    params = _make_params(kp, Cin, Cout)
    x = jax.random.normal(kx, (B, Cin, H, W), jnp.float32)            # NCHW like PyTorch
    out = jax.block_until_ready(resnet_block_pallas(x, params, band_rows=band_rows))
    ref = jax.block_until_ready(resnet_block_ref(x, params))
    assert out.shape == (B, Cout, H, W), out.shape
    # GroupNorm stats are exact f32 now; the remaining difference vs the f32
    # reference is the intentional bf16 rounding of the MXU conv inputs.
    np.testing.assert_allclose(np.asarray(out), np.asarray(ref), rtol=3e-2, atol=3e-2)


if __name__ == "__main__":
    key = jax.random.PRNGKey(0)
    kp1, kx1, kp2, kx2, kp3, kx3 = jax.random.split(key, 6)

    # Case 1: Cin != Cout (1x1 nin_shortcut path), auto band size (1 band here).
    _run_case(kp1, kx1, B=2, Cin=32, Cout=64, H=16, W=16)
    # Case 2: Cin == Cout (identity shortcut), forced 2 bands -> exercises halos.
    _run_case(kp2, kx2, B=2, Cin=64, Cout=64, H=16, W=16, band_rows=8)
    # Case 3: projection shortcut + 4 bands.
    _run_case(kp3, kx3, B=2, Cin=32, Cout=64, H=16, W=16, band_rows=4)

    print("KERNEL_OK")
</pallas_src>

<mosaic_0001>
module attributes {stable_mosaic.version = 11 : i64} {
  func.func @_stage_kernel(%arg0: i32, %arg1: i32, %arg2: memref<1x1x288x32xf32, #tpu.memory_space<vmem>>, %arg3: memref<1x1x32xf32, #tpu.memory_space<vmem>>, %arg4: memref<1x1x32xf32, #tpu.memory_space<vmem>>, %arg5: memref<3x96x64xbf16, #tpu.memory_space<vmem>>, %arg6: memref<1x64xf32, #tpu.memory_space<vmem>>, %arg7: memref<1x1x256x64xf32, #tpu.memory_space<vmem>>) attributes {dimension_semantics = [#tpu.dimension_semantics<parallel>, #tpu.dimension_semantics<parallel>], iteration_bounds = array<i64: 2, 1>, scalar_prefetch = 0 : i64, scratch_operands = 0 : i64, tpu.core_type = #tpu.core_type<tc>, window_params = [{transform_indices = @transform_0, window_bounds = array<i64: 1, 1, 288, 32>}, {transform_indices = @transform_1, window_bounds = array<i64: 1, 1, 32>}, {transform_indices = @transform_2, window_bounds = array<i64: 1, 1, 32>}, {pipeline_mode = #tpu.pipeline_mode<synchronous>, transform_indices = @transform_3, window_bounds = array<i64: 3, 96, 64>}, {pipeline_mode = #tpu.pipeline_mode<synchronous>, transform_indices = @transform_4, window_bounds = array<i64: 1, 64>}, {transform_indices = @transform_5, window_bounds = array<i64: 1, 1, 256, 64>}]} {
    %c0 = arith.constant 0 : index
    %c0_0 = arith.constant 0 : index
    %c0_1 = arith.constant 0 : index
    %c0_2 = arith.constant 0 : index
    %0 = vector.load %arg2[%c0, %c0_0, %c0_1, %c0_2] : memref<1x1x288x32xf32, #tpu.memory_space<vmem>>, vector<1x1x288x32xf32>
    %1 = vector.shape_cast %0 : vector<1x1x288x32xf32> to vector<288x32xf32>
    %c0_3 = arith.constant 0 : index
    %c0_4 = arith.constant 0 : index
    %c0_5 = arith.constant 0 : index
    %2 = vector.load %arg3[%c0_3, %c0_4, %c0_5] : memref<1x1x32xf32, #tpu.memory_space<vmem>>, vector<1x1x32xf32>
    %3 = vector.shape_cast %2 : vector<1x1x32xf32> to vector<1x32xf32>
    %4 = vector.broadcast %3 : vector<1x32xf32> to vector<288x32xf32>
    %5 = arith.mulf %1, %4 : vector<288x32xf32>
    %c0_6 = arith.constant 0 : index
    %c0_7 = arith.constant 0 : index
    %c0_8 = arith.constant 0 : index
    %6 = vector.load %arg4[%c0_6, %c0_7, %c0_8] : memref<1x1x32xf32, #tpu.memory_space<vmem>>, vector<1x1x32xf32>
    %7 = vector.shape_cast %6 : vector<1x1x32xf32> to vector<1x32xf32>
    %8 = vector.broadcast %7 : vector<1x32xf32> to vector<288x32xf32>
    %9 = arith.addf %5, %8 : vector<288x32xf32>
    %10 = arith.negf %9 : vector<288x32xf32>
    %11 = math.exp %10 : vector<288x32xf32>
    %cst = arith.constant 1.000000e+00 : f32
    %12 = vector.broadcast %cst : f32 to vector<288x32xf32>
    %13 = arith.addf %12, %11 : vector<288x32xf32>
    %14 = arith.divf %12, %13 : vector<288x32xf32>
    %15 = arith.mulf %9, %14 : vector<288x32xf32>
    %16 = tpu.iota {dimensions = array<i32: 0>} : vector<288x1xi32>
    %c16_i32 = arith.constant 16 : i32
    %17 = vector.broadcast %c16_i32 : i32 to vector<288x1xi32>
    %18 = arith.cmpi slt, %16, %17 : vector<288x1xi32>
    %c0_i32 = arith.constant 0 : i32
    %19 = arith.cmpi eq, %arg1, %c0_i32 : i32
    %20 = vector.broadcast %19 : i1 to vector<288x1xi1>
    %21 = arith.andi %18, %20 : vector<288x1xi1>
    %c272_i32 = arith.constant 272 : i32
    %22 = vector.broadcast %c272_i32 : i32 to vector<288x1xi32>
    %23 = arith.cmpi sge, %16, %22 : vector<288x1xi32>
    %c0_i32_9 = arith.constant 0 : i32
    %24 = arith.cmpi eq, %arg1, %c0_i32_9 : i32
    %25 = vector.broadcast %24 : i1 to vector<288x1xi1>
    %26 = arith.andi %23, %25 : vector<288x1xi1>
    %27 = arith.ori %21, %26 : vector<288x1xi1>
    %cst_10 = arith.constant 0.000000e+00 : f32
    %28 = vector.shape_cast %27 : vector<288x1xi1> to vector<288x1xi1>
    %29 = vector.broadcast %28 : vector<288x1xi1> to vector<288x32xi1>
    %30 = vector.broadcast %cst_10 : f32 to vector<288x32xf32>
    %31 = arith.select %29, %30, %15 : vector<288x32xi1>, vector<288x32xf32>
    %c16_i32_11 = arith.constant 16 : i32
    %c0_i32_12 = arith.constant 0 : i32
    %32 = arith.cmpi eq, %c16_i32_11, %c0_i32_12 : i32
    %c1_i32 = arith.constant 1 : i32
    %33 = arith.select %32, %c1_i32, %c16_i32_11 : i32
    %34 = vector.broadcast %33 : i32 to vector<288x1xi32>
    %35 = arith.remsi %16, %34 : vector<288x1xi32>
    %c0_i32_13 = arith.constant 0 : i32
    %36 = vector.broadcast %c0_i32_13 : i32 to vector<288x1xi32>
    %37 = arith.cmpi ne, %35, %36 : vector<288x1xi32>
    %c0_i32_14 = arith.constant 0 : i32
    %38 = vector.broadcast %c0_i32_14 : i32 to vector<288x1xi32>
    %39 = arith.cmpi slt, %35, %38 : vector<288x1xi32>
    %c0_i32_15 = arith.constant 0 : i32
    %40 = arith.cmpi slt, %33, %c0_i32_15 : i32
    %41 = vector.broadcast %40 : i1 to vector<288x1xi1>
    %42 = vector.broadcast %41 : vector<288x1xi1> to vector<288x1xi1>
    %43 = arith.xori %39, %42 : vector<288x1xi1>
    %44 = arith.andi %43, %37 : vector<288x1xi1>
    %45 = vector.broadcast %33 : i32 to vector<288x1xi32>
    %46 = arith.addi %35, %45 : vector<288x1xi32>
    %47 = arith.select %44, %46, %35 : vector<288x1xi1>, vector<288x1xi32>
    %c0_i32_16 = arith.constant 0 : i32
    %48 = vector.broadcast %c0_i32_16 : i32 to vector<288x1xi32>
    %49 = arith.cmpi eq, %47, %48 : vector<288x1xi32>
    %c1_i32_17 = arith.constant 1 : i32
    %50 = tpu.dynamic_rotate %31 by %c1_i32_17 dim 0 : vector<288x32xf32>, i32 -> vector<288x32xf32>
    %cst_18 = arith.constant 0.000000e+00 : f32
    %51 = vector.shape_cast %49 : vector<288x1xi1> to vector<288x1xi1>
    %52 = vector.broadcast %51 : vector<288x1xi1> to vector<288x32xi1>
    %53 = vector.broadcast %cst_18 : f32 to vector<288x32xf32>
    %54 = arith.select %52, %53, %50 : vector<288x32xi1>, vector<288x32xf32>
    %c15_i32 = arith.constant 15 : i32
    %55 = vector.broadcast %c15_i32 : i32 to vector<288x1xi32>
    %56 = arith.cmpi eq, %47, %55 : vector<288x1xi32>
    %c287_i32 = arith.constant 287 : i32
    %57 = tpu.dynamic_rotate %31 by %c287_i32 dim 0 : vector<288x32xf32>, i32 -> vector<288x32xf32>
    %cst_19 = arith.constant 0.000000e+00 : f32
    %58 = vector.shape_cast %56 : vector<288x1xi1> to vector<288x1xi1>
    %59 = vector.broadcast %58 : vector<288x1xi1> to vector<288x32xi1>
    %60 = vector.broadcast %cst_19 : f32 to vector<288x32xf32>
    %61 = arith.select %59, %60, %57 : vector<288x32xi1>, vector<288x32xf32>
    %62 = arith.truncf %54 : vector<288x32xf32> to vector<288x32xbf16>
    %63 = arith.truncf %31 : vector<288x32xf32> to vector<288x32xbf16>
    %64 = arith.truncf %61 : vector<288x32xf32> to vector<288x32xbf16>
    %65 = tpu.concatenate %62, %63, %64 in 1 : vector<288x32xbf16>, vector<288x32xbf16>, vector<288x32xbf16> -> vector<288x96xbf16>
    %66 = vector.extract_strided_slice %65 {offsets = [16, 0], sizes = [256, 96], strides = [1, 1]} : vector<288x96xbf16> to vector<256x96xbf16>
    %c1 = arith.constant 1 : index
    %c0_20 = arith.constant 0 : index
    %c0_21 = arith.constant 0 : index
    %67 = vector.load %arg5[%c1, %c0_20, %c0_21] : memref<3x96x64xbf16, #tpu.memory_space<vmem>>, vector<1x96x64xbf16>
    %68 = vector.shape_cast %67 : vector<1x96x64xbf16> to vector<96x64xbf16>
    %cst_22 = arith.constant dense<0.000000e+00> : vector<256x64xf32>
    %69 = tpu.matmul %66, %68, %cst_22 {dimension_numbers = #tpu.dot_dimension_numbers<[1], [0], [0], [1], [0, 0, 1, 1], [], []>} : vector<256x96xbf16>, vector<96x64xbf16>, vector<256x64xf32> -> vector<256x64xf32>
    %70 = vector.extract_strided_slice %65 {offsets = [0, 0], sizes = [256, 96], strides = [1, 1]} : vector<288x96xbf16> to vector<256x96xbf16>
    %c0_23 = arith.constant 0 : index
    %c0_24 = arith.constant 0 : index
    %c0_25 = arith.constant 0 : index
    %71 = vector.load %arg5[%c0_23, %c0_24, %c0_25] : memref<3x96x64xbf16, #tpu.memory_space<vmem>>, vector<1x96x64xbf16>
    %72 = vector.shape_cast %71 : vector<1x96x64xbf16> to vector<96x64xbf16>
    %cst_26 = arith.constant dense<0.000000e+00> : vector<256x64xf32>
    %73 = tpu.matmul %70, %72, %cst_26 {dimension_numbers = #tpu.dot_dimension_numbers<[1], [0], [0], [1], [0, 0, 1, 1], [], []>} : vector<256x96xbf16>, vector<96x64xbf16>, vector<256x64xf32> -> vector<256x64xf32>
    %74 = arith.addf %69, %73 : vector<256x64xf32>
    %75 = vector.extract_strided_slice %65 {offsets = [32, 0], sizes = [256, 96], strides = [1, 1]} : vector<288x96xbf16> to vector<256x96xbf16>
    %c2 = arith.constant 2 : index
    %c0_27 = arith.constant 0 : index
    %c0_28 = arith.constant 0 : index
    %76 = vector.load %arg5[%c2, %c0_27, %c0_28] : memref<3x96x64xbf16, #tpu.memory_space<vmem>>, vector<1x96x64xbf16>
    %77 = vector.shape_cast %76 : vector<1x96x64xbf16> to vector<96x64xbf16>
    %cst_29 = arith.constant dense<0.000000e+00> : vector<256x64xf32>
    %78 = tpu.matmul %75, %77, %cst_29 {dimension_numbers = #tpu.dot_dimension_numbers<[1], [0], [0], [1], [0, 0, 1, 1], [], []>} : vector<256x96xbf16>, vector<96x64xbf16>, vector<256x64xf32> -> vector<256x64xf32>
    %79 = arith.addf %74, %78 : vector<256x64xf32>
    %c0_30 = arith.constant 0 : index
    %c0_31 = arith.constant 0 : index
    %80 = vector.load %arg6[%c0_30, %c0_31] : memref<1x64xf32, #tpu.memory_space<vmem>>, vector<1x64xf32>
    %81 = vector.broadcast %80 : vector<1x64xf32> to vector<256x64xf32>
    %82 = arith.addf %79, %81 : vector<256x64xf32>
    %c0_32 = arith.constant 0 : index
    %c0_33 = arith.constant 0 : index
    %c0_34 = arith.constant 0 : index
    %c0_35 = arith.constant 0 : index
    %83 = vector.load %arg7[%c0_32, %c0_33, %c0_34, %c0_35] : memref<1x1x256x64xf32, #tpu.memory_space<vmem>>, vector<1x1x256x64xf32>
    %84 = vector.shape_cast %83 : vector<1x1x256x64xf32> to vector<256x64xf32>
    %85 = vector.shape_cast %82 : vector<256x64xf32> to vector<1x1x256x64xf32>
    tpu.vector_store %arg7[%c0_32, %c0_33, %c0_34, %c0_35], %85 {strides = array<i32>} : memref<1x1x256x64xf32, #tpu.memory_space<vmem>>, vector<1x1x256x64xf32>,
    return
  }
  func.func @transform_0(%arg0: i32, %arg1: i32) -> (i32, i32, i32, i32) {
    %c0_i32 = arith.constant 0 : i32
    %c0_i32_0 = arith.constant 0 : i32
    %c0_i32_1 = arith.constant 0 : i32
    return %arg0, %arg1, %c0_i32, %c0_i32_0 : i32, i32, i32, i32
  }
  func.func @transform_1(%arg0: i32, %arg1: i32) -> (i32, i32, i32) {
    %c0_i32 = arith.constant 0 : i32
    %c0_i32_0 = arith.constant 0 : i32
    %c0_i32_1 = arith.constant 0 : i32
    return %arg0, %c0_i32, %c0_i32_0 : i32, i32, i32
  }
  func.func @transform_2(%arg0: i32, %arg1: i32) -> (i32, i32, i32) {
    %c0_i32 = arith.constant 0 : i32
    %c0_i32_0 = arith.constant 0 : i32
    %c0_i32_1 = arith.constant 0 : i32
    return %arg0, %c0_i32, %c0_i32_0 : i32, i32, i32
  }
  func.func @transform_3(%arg0: i32, %arg1: i32) -> (i32, i32, i32) {
    %c0_i32 = arith.constant 0 : i32
    %c0_i32_0 = arith.constant 0 : i32
    %c0_i32_1 = arith.constant 0 : i32
    %c0_i32_2 = arith.constant 0 : i32
    return %c0_i32, %c0_i32_0, %c0_i32_1 : i32, i32, i32
  }
  func.func @transform_4(%arg0: i32, %arg1: i32) -> (i32, i32) {
    %c0_i32 = arith.constant 0 : i32
    %c0_i32_0 = arith.constant 0 : i32
    %c0_i32_1 = arith.constant 0 : i32
    return %c0_i32, %c0_i32_0 : i32, i32
  }
  func.func @transform_5(%arg0: i32, %arg1: i32) -> (i32, i32, i32, i32) {
    %c0_i32 = arith.constant 0 : i32
    %c0_i32_0 = arith.constant 0 : i32
    %c0_i32_1 = arith.constant 0 : i32
    return %arg0, %arg1, %c0_i32, %c0_i32_0 : i32, i32, i32, i32
  }
}

</mosaic_0001>

<bundles_post_ra>
// kernel: tpu_custom_call.1
= control target key start
LH: loop header
LB: loop body
LE: loop exit
PB: predicated region body
PF: predicated region fallthrough
CT: control target
= control target key end

     0   :  { %s5449_s0 = inlined_call_operand.hbm [shape: f32[2,1,288,32], index: 0, kind: input, shape index: {}]   ;;  %s5450_s1 = inlined_call_operand.hbm [shape: f32[2,1,32], index: 1, kind: input, shape index: {}]   ;;  %s5451_s2 = inlined_call_operand.hbm [shape: f32[2,1,32], index: 2, kind: input, shape index: {}]   ;;  %s5452_s3 = inlined_call_operand.hbm [shape: bf16[3,96,64], index: 3, kind: input, shape index: {}]   ;;  %s5453_s4 = inlined_call_operand.hbm [shape: f32[1,64], index: 4, kind: input, shape index: {}]   ;;  %s5454_s5 = inlined_call_operand.hbm [shape: f32[2,1,256,64], index: 5, kind: output, shape index: {}]  }
   0x1   :  { %5472 = sst [smem:[#allocation20_spill]] %s5450_s1 }
   0x2   :  { %5473 = sst [smem:[#allocation21_spill]] %s5452_s3 }
   0x3   :  { %10 = vsyncpa [#allocation3], 0 }
   0x4   :  { %12 = vsyncpa [#allocation3 + $0x1], 0 }
   0x5   :  { %13 = vsyncpa [#allocation6], 0 }
   0x6   :  { %15 = vsyncpa [#allocation6 + $0x1], 0 }
   0x7   :  { %16 = vsyncpa [#allocation9], 0 }
   0x8   :  { %17 = vsyncpa [#allocation4], 0 }
   0x9   :  { %19 = vsyncpa [#allocation4 + $0x1], 0  ;;  %s4046_s18 = smov 0   ;;  %s4048_s19 = smov 0  }
   0xa   :  { %s4050_s20 = smov 0   ;;  %s4052_s21 = smov 0  }
   0xb   :  { %s4054_s22 = smov 0   ;;  %s4056_s23 = smov 0  }
   0xc LB: > { %5474 = sst [smem:[#allocation16_spill]] %s3986_s20  ;;  %s4077_s24 = sadd.s32 4294967295, %s3998_s23   ;;  %s3998_s23 = sphi %s4056_s23, %s25_s23   ;;  %s3994_s22 = sphi %s4054_s22, %s5550_s22   ;;  %s3990_s21 = sphi %s4052_s21, %s5549_s21   ;;  %s3986_s20 = sphi %s4050_s20, %s5545_s20   ;;  %s3982_s19 = sphi %s4048_s19, %s5548_s19   ;;  %s3978_s18 = sphi %s4046_s18, %s5547_s18  }
   0xd   : > { %5475 = sst [smem:[#allocation17_spill]] %s3998_s23  ;;  %s3106_s25 = sadd.s32 4294967294, %s3998_s23  }
   0xe   : > { %p59_p0 = scmp.ne.s32.totalorder %s3982_s19, %s3978_s18  ;;  %p5455_p1 = scmp.eq.s32.totalorder %s4077_s24, 0 }
   0xf   : > { %p185_p3 = scmp.eq.s32.totalorder %s3106_s25, 1  ;;  %p3107_p5 = scmp.ge.s32.totalorder %s3998_s23, 1 }
  0x10   : > { %p4086_p4 = por %p5455_p1, %p59_p0  ;;  %p192_p7 = scmp.lt.s32.totalorder %s3998_s23, 3 }
  0x11   : > { %p4091_p6 = por %p185_p3, %p59_p0  ;;  %s4000_s29 = smov [#allocation8]  }
  0x12   : > { %s5476_s26 = scalar_select %p4086_p4, 1, 0 }
  0x13   : > { %s5477_s27 = scalar_select %p4091_p6, 1, 0 }
  0x14   : > { %p4096_p8 = pnand %p3107_p5, %p192_p7  ;;  %s204_s30 = sshll.u32 %s4000_s29, 4  ;;  %s205_s30 = int_to_ptr.vmem [resolvable:$true] %s204_s30 }
  0x15   : > { %s37_s7 = sadd.s32 1, %s3994_s22  ;;  %s5480_s3 = sld [smem:[#allocation21_spill]] }
  0x16   : > { %s5478_s28 = scalar_select %p4096_p8, 1, 0 }
  0x17   : > { %p3522_p9 = pneg %p4096_p8 }
  0x19   : > { %p4105_p11 = pnand %p3522_p9, %p5455_p1 }
  0x1b   : > { %s5479_s6 = scalar_select %p4105_p11, 1, 0 }
  0x1c   : > { %s3762_s10 = scalar_lea.hbm %s5480_s3, 2304  ;;  %p5460_p13 = pneg %p4105_p11 }
  0x1d   : > { %p3763_p12 = scmp.ne.s32.totalorder %s5480_s3, %s3762_s10  ;;  %p3769_p5 = scmp.lt.u32.totalorder %s3762_s10, %s5480_s3 }
  0x1f   : > { %p3765_p0 = pnand %p5460_p13, %p3763_p12 }
  0x21   : > { %p3766_p3 = pneg %p3765_p0 }
  0x23   : > { %p3771_p7 = pnand %p3769_p5, %p3766_p3 }
  0x25   : > { %3774 = shalt.err (!%p3771_p7)
}
  0x26   : > { %s3775_s15 = scalar_lea.vmem %s205_s30, 2304  ;;  %p3783_p2 = scmp.lt.s32.totalorder %s205_s30, %s205_s30 }
  0x27   : > { %p3776_p9 = scmp.ne.s32.totalorder %s205_s30, %s3775_s15  ;;  %p3784_p6 = scmp.lt.s32.totalorder %s3775_s15, %s3775_s15 }
  0x29   : > { %p3778_p10 = pnand %p3776_p9, %p5460_p13  ;;  %p3785_p4 = por %p3784_p6, %p3783_p2 }
  0x2b   : > { %p3779_p1 = pneg %p3778_p10 }
  0x2d   : > { %p3786_p8 = pnand %p3785_p4, %p3779_p1 }
  0x2f   : > { %3789 = shalt.err (!%p3786_p8)
}
  0x30   : > { %s4001_s16 = smov 64   ;;  %s4002_s17 = smov 4  }
  0x31   : > { %3525 = dma.hbm_to_vmem [thread:$0]  (!%p4105_p11), %s5480_s3, 2304, %s205_s30, [#allocation9], %s4001_s16, %s4001_s16, %s4002_s17  }
  0x32   : > { %p39_p1 = scmp.ge.s32.totalorder %s37_s7, 2  ;;  %s46_s8 = sadd.s32 1, %s3986_s20 }
  0x33   : > { %p53_p2 = scmp.ne.s32.totalorder %s3986_s20, %s3982_s19  ;;  %p54_p4 = scmp.eq.s32.totalorder %s3998_s23, 0 }
  0x34   : > { %s5552_s7 = smov (%p39_p1, %s37_s7), 0  ;;  %p5482_p8 = scmp.eq.s32.totalorder %s4077_s24, 1 }
  0x35   : > { %5481 = sst [smem:[#allocation18_spill]] %s5552_s7  ;;  %p55_p6 = por %p54_p4, %p53_p2 }
  0x36   : > { %p4140_p10 = por %p5482_p8, %p53_p2  ;;  %s41_s10 = ssub.s32 %s3994_s22, %s5552_s7 }
  0x37   : > { %p3545_p12 = scmp.lt.s32.totalorder %s3998_s23, 2  ;;  %p44_p0 = scmp.eq.s32.totalorder %s41_s10, 0 }
  0x38   : > { %s5483_s9 = scalar_select %p4140_p10, 1, 0 }
  0x39   : > { %s4148_s11 = sand.u32 1, %s3986_s20   ;;  %p4150_p3 = pnand %p3545_p12, %p55_p6 }
  0x3a   : > { %s252_s12 = sand.u32 1, %s3998_s23   ;;  %s5458_s14 = sshll.u32 %s3994_s22, 4 }
  0x3b   : > { %s5484_s30 = scalar_select %p4150_p3, 1, 0 }
  0x3c   : > { %s4156_s13 = scalar_select %p44_p0, %s3986_s20, %s46_s8  }
  0x3d   : > { %s5486_s1 = sld [smem:[#allocation20_spill]]  ;;  %s255_s25 = scalar_lea.vmem [#allocation5], %s4148_s11 }
  0x3e   : > { %5485 = sst [smem:[#allocation19_spill]] %s4156_s13  ;;  %s262_s29 = sshll.u32 %s255_s25, 4  ;;  %s4167_s29 = int_to_ptr.vmem [resolvable:$true] %s262_s29 }
  0x3f   : > { %s4169_s10 = scalar_lea.sflag [#allocation6], %s252_s12  ;;  %p4175_p7 = pneg %p4150_p3 }
  0x41   : > { %s5487_s8 = scalar_select %p4175_p7, 1, 0 }
  0x43   : > { %s4164_s17 = scalar_lea.hbm %s5486_s1, %s5458_s14  ;;  %s3795_s14 = scalar_lea.hbm %s5486_s1, 32 }
  0x44   : > { %s3790_s3 = scalar_lea.hbm %s4164_s17, 16  ;;  %p3796_p2 = scmp.lt.u32.totalorder %s4164_s17, %s5486_s1 }
  0x45   : > { %p3791_p5 = scmp.ne.s32.totalorder %s4164_s17, %s3790_s3  ;;  %p3797_p4 = scmp.lt.u32.totalorder %s3795_s14, %s3790_s3 }
  0x46   : > { %p3799_p8 = scmp.lt.u32.totalorder %s3790_s3, %s4164_s17 }
  0x47   : > { %p3793_p9 = pnand %p4175_p7, %p3791_p5  ;;  %p3798_p6 = por %p3797_p4, %p3796_p2 }
  0x49   : > { %p3794_p1 = pneg %p3793_p9  ;;  %p3800_p12 = por %p3799_p8, %p3798_p6 }
  0x4b   : > { %p3801_p0 = pnand %p3800_p12, %p3794_p1 }
  0x4d   : > { %3804 = shalt.err (!%p3801_p0)
}
  0x4e   : > { %s3805_s12 = scalar_lea.vmem %s4167_s29, 16  ;;  %s4003_s15 = smov [#allocation5]  }
  0x4f   : > { %p3806_p5 = scmp.ne.s32.totalorder %s4167_s29, %s3805_s12  ;;  %s3810_s16 = sshll.u32 %s4003_s15, 4  ;;  %s3811_s16 = int_to_ptr.vmem [resolvable:$false] %s3810_s16 }
  0x50   : > { %s3812_s7 = scalar_lea.vmem %s3811_s16, 32  ;;  %p3813_p10 = scmp.lt.s32.totalorder %s4167_s29, %s3811_s16 }
  0x51   : > { %p3808_p9 = pnand %p3806_p5, %p4175_p7  ;;  %p3814_p11 = scmp.lt.s32.totalorder %s3812_s7, %s3805_s12 }
  0x53   : > { %p3809_p13 = pneg %p3808_p9  ;;  %p3815_p2 = por %p3814_p11, %p3813_p10 }
  0x55   : > { %p3816_p4 = pnand %p3815_p2, %p3809_p13 }
  0x57   : > { %3819 = shalt.err (!%p3816_p4)
}
  0x58   : > { %3535 = dma.hbm_to_vmem [thread:$0]  (!%p4150_p3), %s4164_s17, 16, %s4167_s29, %s4169_s10  }
  0x59   : > { %s4004_s3 = smov [#allocation10]   ;;  %s3503_s25 = smul.u32 288, %s4148_s11 }
  0x5a   : > { %s218_s14 = sshll.u32 %s4004_s3, 4  ;;  %s3504_s15 = smul.u32 4608, %s3994_s22  ;;  %s219_s14 = int_to_ptr.vmem [resolvable:$true] %s218_s14 }
  0x5b   : > { %s3820_s12 = scalar_lea.hbm %s5453_s4, 16  ;;  %p5488_p13 = scmp.ne.s32.totalorder %s5479_s6, 0 }
  0x5c   : > { %p3821_p11 = scmp.ne.s32.totalorder %s5453_s4, %s3820_s12  ;;  %p3827_p8 = scmp.lt.u32.totalorder %s3820_s12, %s5453_s4 }
  0x5d   : > { %p5489_p10 = pneg %p5488_p13 }
  0x5f   : > { %p3823_p1 = pnand %p3821_p11, %p5489_p10 }
  0x61   : > { %p3824_p6 = pneg %p3823_p1 }
  0x63   : > { %p3829_p12 = pnand %p3827_p8, %p3824_p6 }
  0x65   : > { %3832 = shalt.err (!%p3829_p12)
}
  0x66   : > { %s3833_s17 = scalar_lea.vmem %s219_s14, 16  ;;  %p5490_p5 = pmov %p5489_p10 }
  0x67   : > { %p3834_p0 = scmp.ne.s32.totalorder %s219_s14, %s3833_s17  ;;  %s3840_s1 = scalar_lea.vmem %s219_s14, 32 }
  0x68   : > { %p3841_p4 = scmp.lt.s32.totalorder %s219_s14, %s219_s14  ;;  %p3842_p3 = scmp.lt.s32.totalorder %s3840_s1, %s3833_s17 }
  0x69   : > { %p3836_p9 = pnand %p3834_p0, %p5490_p5 }
  0x6a   : > { %p3843_p7 = por %p3842_p3, %p3841_p4 }
  0x6b   : > { %p3837_p2 = pneg %p3836_p9 }
  0x6d   : > { %p3844_p10 = pnand %p3843_p7, %p3837_p2 }
  0x6f   : > { %3847 = shalt.err (!%p3844_p10)
}
  0x70   : > { %3528 = dma.hbm_to_vmem [thread:$0]  (!%p5488_p13), %s5453_s4, 16, %s219_s14, [#allocation9]  }
  0x71   : > { %s4224_s3 = scalar_lea.hbm %s5449_s0, %s3504_s15  ;;  %s233_s16 = scalar_lea.vmem [#allocation2], %s3503_s25 }
  0x72   : > { %s242_s12 = sshll.u32 %s233_s16, 4  ;;  %s230_s6 = scalar_lea.sflag [#allocation3], %s4148_s11  ;;  %s4226_s12 = int_to_ptr.vmem [resolvable:$true] %s242_s12 }
  0x73   : > { %s3848_s7 = scalar_lea.hbm %s4224_s3, 4608  ;;  %p5491_p7 = scmp.ne.s32.totalorder %s5487_s8, 0 }
  0x74   : > { %p3849_p3 = scmp.ne.s32.totalorder %s4224_s3, %s3848_s7  ;;  %s3853_s1 = scalar_lea.hbm %s5449_s0, 9216 }
  0x75   : > { %p3854_p13 = scmp.lt.u32.totalorder %s4224_s3, %s5449_s0  ;;  %p3855_p6 = scmp.lt.u32.totalorder %s3853_s1, %s3848_s7 }
  0x76   : > { %p3851_p11 = pnand %p3849_p3, %p5491_p7  ;;  %p3857_p12 = scmp.lt.u32.totalorder %s3848_s7, %s4224_s3 }
  0x77   : > { %p3856_p8 = por %p3855_p6, %p3854_p13 }
  0x78   : > { %p3852_p1 = pneg %p3851_p11 }
  0x79   : > { %p3858_p0 = por %p3857_p12, %p3856_p8 }
  0x7b   : > { %p3859_p5 = pnand %p3858_p0, %p3852_p1 }
  0x7d   : > { %3862 = shalt.err (!%p3859_p5)
}
  0x7e   : > { %s3863_s25 = scalar_lea.vmem %s4226_s12, 4608  ;;  %s4005_s20 = smov [#allocation2]  }
  0x7f   : > { %p3864_p9 = scmp.ne.s32.totalorder %s4226_s12, %s3863_s25  ;;  %s3868_s23 = sshll.u32 %s4005_s20, 4  ;;  %s3869_s23 = int_to_ptr.vmem [resolvable:$false] %s3868_s23 }
  0x80   : > { %s3870_s29 = scalar_lea.vmem %s3869_s23, 9216  ;;  %p3871_p10 = scmp.lt.s32.totalorder %s4226_s12, %s3869_s23 }
  0x81   : > { %p3866_p2 = pnand %p3864_p9, %p5491_p7  ;;  %p3872_p3 = scmp.lt.s32.totalorder %s3870_s29, %s3863_s25 }
  0x83   : > { %p3867_p4 = pneg %p3866_p2  ;;  %p3873_p11 = por %p3872_p3, %p3871_p10 }
  0x85   : > { %p3874_p13 = pnand %p3873_p11, %p3867_p4 }
  0x87   : > { %3877 = shalt.err (!%p3874_p13)
}
  0x88   : > { %s4006_s16 = smov 128   ;;  %s4007_s7 = smov 8  }
  0x89   : > { %p5492_p1 = scmp.ne.s32.totalorder %s5484_s30, 0  ;;  %s5493_s14 = sshll.u32 %s3994_s22, 4 }
  0x8a   : > { %s4257_s15 = scalar_lea.hbm %s5451_s2, %s5493_s14  ;;  %s272_s13 = scalar_lea.vmem [#allocation7], %s4148_s11 }
  0x8b   : > { %3532 = dma.hbm_to_vmem [thread:$0]  (!%p5492_p1), %s4224_s3, 4608, %s4226_s12, %s230_s6, %s4006_s16, %s4006_s16, %s4007_s7  }
  0x8c   : > { %s279_s25 = sshll.u32 %s272_s13, 4  ;;  %s3878_s20 = scalar_lea.hbm %s4257_s15, 16  ;;  %s280_s25 = int_to_ptr.vmem [resolvable:$true] %s279_s25 }
  0x8d   : > { %p3879_p6 = scmp.ne.s32.totalorder %s4257_s15, %s3878_s20  ;;  %s3883_s12 = scalar_lea.hbm %s5451_s2, 32 }
  0x8e   : > { %p3884_p0 = scmp.lt.u32.totalorder %s4257_s15, %s5451_s2  ;;  %p3885_p5 = scmp.lt.u32.totalorder %s3883_s12, %s3878_s20 }
  0x8f   : > { %p3881_p8 = pnand %p3879_p6, %p5491_p7  ;;  %p3887_p2 = scmp.lt.u32.totalorder %s3878_s20, %s4257_s15 }
  0x90   : > { %p3886_p9 = por %p3885_p5, %p3884_p0 }
  0x91   : > { %p3882_p12 = pneg %p3881_p8 }
  0x92   : > { %p3888_p4 = por %p3887_p2, %p3886_p9 }
  0x94   : > { %p3889_p10 = pnand %p3888_p4, %p3882_p12 }
  0x96   : > { %3892 = shalt.err (!%p3889_p10)
}
  0x97   : > { %s3893_s11 = scalar_lea.vmem %s280_s25, 16  ;;  %s4008_s16 = smov [#allocation7]  }
  0x98   : > { %p3894_p3 = scmp.ne.s32.totalorder %s280_s25, %s3893_s11  ;;  %s3898_s7 = sshll.u32 %s4008_s16, 4  ;;  %s3899_s7 = int_to_ptr.vmem [resolvable:$false] %s3898_s7 }
  0x99   : > { %s3900_s14 = scalar_lea.vmem %s3899_s7, 32  ;;  %p3901_p6 = scmp.lt.s32.totalorder %s280_s25, %s3899_s7 }
  0x9a   : > { %p3896_p11 = pnand %p3894_p3, %p5491_p7  ;;  %p3902_p8 = scmp.lt.s32.totalorder %s3900_s14, %s3893_s11 }
  0x9c   : > { %p3897_p13 = pneg %p3896_p11  ;;  %p3903_p1 = por %p3902_p8, %p3901_p6 }
  0x9e   : > { %p3904_p0 = pnand %p3903_p1, %p3897_p13 }
  0xa0   : > { %3907 = shalt.err (!%p3904_p0)
}
  0xa1   : > { %p5494_p5 = scmp.ne.s32.totalorder %s5484_s30, 0  ;;  %p5495_p12 = scmp.ne.s32.totalorder %s5478_s28, 0 }
  0xa2   : > { %s4281_s8 = sand.u32 (!%p5495_p12), 1, %s3982_s19   ;;  %p5496_p7 = scmp.ne.s32.totalorder (!%p5495_p12), %s5476_s26, 0 }
  0xa3   : > { %3538 = dma.hbm_to_vmem [thread:$0]  (!%p5494_p5), %s4257_s15, 16, %s280_s25, %s4169_s10  }
  0xa4   : > { %288 = sbr.rel (%p5495_p12) target bundleno = 675 (0x2a3), region = 40  ;;  %s291_s1 = scalar_lea.sflag (!%p5495_p12), [#allocation3], %s4281_s8 }
  0xa5   : > { %s3505_s17 = smul.u32 (!%p5495_p12), 288, %s4281_s8 }
  0xa7   : > { %s4285_s13 = scalar_lea.vmem (!%p5495_p12), [#allocation2], %s3505_s17 }
  0xab   : > { %3961 = dma.done.wait (%p5496_p7), %s291_s1, 4608  }
  0xac   : > { %3963 = vsyncadd (%p5496_p7), %s291_s1, 4294962688  ;;  %s299_s28 = sand.u32 1, %s4077_s24   ;;  %s302_s10 = scalar_lea.vmem [#allocation5], %s4281_s8 }
  0xad   : > { %s300_s30 = scalar_lea.sflag [#allocation6], %s299_s28 }
  0xae   : > { %3965 = dma.done.wait (%p5496_p7), %s300_s30, 32  }
  0xaf   : > { %3967 = vsyncadd (%p5496_p7), %s300_s30, 4294967264  ;;  %s310_s15 = scalar_lea.vmem [#allocation7], %s4281_s8  ;;  %p5497_p1 = scmp.eq.s32.totalorder %s4077_s24, 0 }
  0xb1   : > { %3969 = dma.done.wait (%p5497_p1), [#allocation9], 2320   ;;  %p5498_p9 = pmov %p5497_p1 }
  0xb2   : > { %v728_v0 = vlaneseq  ;;  %v5471_v1 = vmov 0.0|0.0   ;;  %s4010_s25 = smov 32   ;;  %v358_v3 = vld [vmem:[%s4285_s13 + $0x20] sm:$0xff]  ;;  %v359_v4 = vld [vmem:[%s4285_s13 + $0x28] sm:$0xff]  ;;  %v4011_v6 = vmov 0.0   ;;  %v356_v12 = vld [vmem:[%s4285_s13 + $0x10] sm:$0xff] }
  0xb3   : > { %3971 = vsyncadd (%p5498_p9), [#allocation9], 4294964976  ;;  %1995 = vrot.lane.b32.xlu0 %v5471_v1, %s4010_s25  ;;  %v4308_v5 = vld [vmem:[%s302_s10] ss:$0 sm:$0xff]  ;;  %v4310_v7 = vrot.slane %v4011_v6, 7  ;;  %v4312_v8 = vrot.slane %v4011_v6, 1 }
  0xb4   : > { %v4304_v2 = vshrl.u32 %v728_v0, 7  ;;  %v401_v9 = vmul.f32 %v4308_v5, %v358_v3  ;;  %v402_v10 = vmul.f32 %v4308_v5, %v359_v4  ;;  %v4316_v11 = vld [vmem:[%s310_s15] ss:$0 sm:$0xff]  ;;  %v357_v13 = vld [vmem:[%s4285_s13 + $0x18] sm:$0xff]  ;;  %v399_v16 = vmul.f32 %v4308_v5, %v356_v12  ;;  %v360_v18 = vld [vmem:[%s4285_s13 + $0x30] sm:$0xff]  ;;  %s4012_s24 = smov 64  }
  0xb5   : > { %v400_v17 = vmul.f32 %v4308_v5, %v357_v13  ;;  %v361_v20 = vld [vmem:[%s4285_s13 + $0x38] sm:$0xff]  ;;  %v362_v21 = vld [vmem:[%s4285_s13 + $0x40] sm:$0xff]  ;;  %v403_v25 = vmul.f32 %v4308_v5, %v360_v18  ;;  %v363_v27 = vld [vmem:[%s4285_s13 + $0x48] sm:$0xff]  ;;  %s3117_s26 = sshll.u32 %s4281_s8, 8  ;;  %s3228_s23 = sshll.u32 %s3990_s21, 12 }
  0xb6   : > { %v4321_v14 = vadd.s32 8, %v4304_v2  ;;  %v4324_v15 = vadd.s32 24, %v4304_v2  ;;  %v4330_v19 = vadd.s32 40, %v4304_v2  ;;  %v4335_v22 = vadd.s32 56, %v4304_v2  ;;  %v364_v32 = vld [vmem:[%s4285_s13 + $0x50] sm:$0xff]  ;;  %v365_v41 = vld [vmem:[%s4285_s13 + $0x58] sm:$0xff]  ;;  %s5391_s29 = scalar_lea.hbm %s5454_s5, %s3228_s23 }
  0xb7   : > { %v4338_v23 = vadd.f32 %v4316_v11, %v401_v9  ;;  %v4341_v24 = vadd.f32 %v4316_v11, %v402_v10  ;;  %v404_v26 = vmul.f32 %v4308_v5, %v361_v20  ;;  %v4347_v28 = vadd.f32 %v4316_v11, %v399_v16  ;;  %v366_v42 = vld [vmem:[%s4285_s13 + $0x60] sm:$0xff]  ;;  %v367_v46 = vld [vmem:[%s4285_s13 + $0x68] sm:$0xff]  ;;  %v368_v47 = vld [vmem:[%s4285_s13 + $0x70] sm:$0xff]  ;;  %s5297_s20 = scalar_lea.vmem [#allocation11], %s3117_s26  ;;  %s2947_s21 = scalar_lea.sflag [#allocation4], %s4281_s8 }
  0xb8   : > { %v4350_v29 = vadd.f32 %v4316_v11, %v400_v17  ;;  %v405_v30 = vmul.f32 %v4308_v5, %v362_v21  ;;  %v406_v31 = vmul.f32 %v4308_v5, %v363_v27  ;;  %v4358_v35 = vadd.f32 %v4316_v11, %v403_v25  ;;  %v369_v60 = vld [vmem:[%s4285_s13 + $0x78] sm:$0xff]  ;;  %v370_v0 = vld [vmem:[%s4285_s13 + $0x80] sm:$0xff]  ;;  %v371_v6 = vld [vmem:[%s4285_s13 + $0x88] sm:$0xff]  ;;  %s2962_s3 = sshll.u32 %s5297_s20, 4  ;;  %p5540_p4 = scmp.ne.s32.totalorder %s5483_s9, 0  ;;  %s5393_s3 = int_to_ptr.vmem [resolvable:$true] %s2962_s3 }
  0xb9   : > { %v3124_v33 = vmul.f32 -1.442695, %v4338_v23  ;;  %v3125_v34 = vmul.f32 -1.442695, %v4341_v24  ;;  %v4361_v36 = vadd.f32 %v4316_v11, %v404_v26  ;;  %v3122_v37 = vmul.f32 -1.442695, %v4347_v28 }
  0xba   : > { %v3123_v38 = vmul.f32 -1.442695, %v4350_v29  ;;  %v4366_v39 = vadd.f32 %v4316_v11, %v405_v30  ;;  %v4369_v40 = vadd.f32 %v4316_v11, %v406_v31  ;;  %v3126_v43 = vmul.f32 -1.442695, %v4358_v35  ;;  %v3609_v9 = vld [vmem:[#allocation8] sm:$0xff]   ;;  %v372_v17 = vld [vmem:[%s4285_s13 + $0x90] sm:$0xff] }
  0xbb   : > { %3627 = vpow2.f32 %v3124_v33  ;;  %v407_v44 = vmul.f32 %v4308_v5, %v364_v32  ;;  %v4376_v45 = vadd.s32 72, %v4304_v2  ;;  %v3127_v48 = vmul.f32 -1.442695, %v4361_v36  ;;  %3295 = vmatprep.subr.bf16.mxu1 %v3609_v9  ;;  %v4419_v18 = vld [vmem:[#allocation8 + $0x30] sm:$0xff]   ;;  %v3611_v25 = vld [vmem:[#allocation8 + $0x8] sm:$0xff]   ;;  %v3612_v31 = vld [vmem:[#allocation8 + $0x38] sm:$0xff]  }
  0xbc   : > { %3629 = vpow2.f32 %v3125_v34  ;;  %v3128_v49 = vmul.f32 -1.442695, %v4366_v39  ;;  %v4383_v50 = vadd.s32 88, %v4304_v2  ;;  %v408_v52 = vmul.f32 %v4308_v5, %v365_v41  ;;  %3296 = vmatpush3.bf16.msra.mxu1 %v3609_v9  ;;  %3339 = vmatprep.subr.bf16.mxu0 %v4419_v18  ;;  %s3908_s11 = scalar_lea.vmem %s5393_s3, 4096  ;;  %s4013_s16 = smov [#allocation11]  }
  0xbd   : > { %3631 = vpow2.f32 %v3122_v37  ;;  %v4386_v51 = vadd.f32 %v4316_v11, %v407_v44  ;;  %v409_v53 = vmul.f32 %v4308_v5, %v366_v42  ;;  %v3129_v54 = vmul.f32 -1.442695, %v4369_v40  ;;  %3340 = vmatpush3.bf16.msra.mxu0 %v4419_v18  ;;  %3297 = vmatprep.subr.bf16.mxu1 %v3611_v25  ;;  %v3613_v44 = vld [vmem:[#allocation8 + $0x10] sm:$0xff]   ;;  %p3909_p2 = scmp.ne.s32.totalorder %s5393_s3, %s3908_s11  ;;  %s3912_s7 = sshll.u32 %s4013_s16, 4  ;;  %s3913_s7 = int_to_ptr.vmem [resolvable:$false] %s3912_s7 }
  0xbe   : > { %3633 = vpow2.f32 %v3123_v38  ;;  %v410_v55 = vmul.f32 %v4308_v5, %v367_v46  ;;  %v411_v56 = vmul.f32 %v4308_v5, %v368_v47  ;;  %v4395_v58 = vadd.f32 %v4316_v11, %v408_v52  ;;  %3341 = vmatprep.subr.bf16.mxu0 %v3612_v31  ;;  %v373_v52 = vld [vmem:[%s4285_s13 + $0x98] sm:$0xff]  ;;  %s3914_s14 = scalar_lea.vmem %s3913_s7, 8192  ;;  %p3915_p11 = scmp.lt.s32.totalorder %s5393_s3, %s3913_s7 }
  0xbf   : > { %3635 = vpow2.f32 %v3126_v43  ;;  %v3130_v57 = vmul.f32 -1.442695, %v4386_v51  ;;  %v4398_v59 = vadd.f32 %v4316_v11, %v409_v53  ;;  %v4408_v63 = vadd.s32 104, %v4304_v2  ;;  %p3910_p10 = pnand %p3909_p2, %p5540_p4  ;;  %p3916_p13 = scmp.lt.s32.totalorder %s3914_s14, %s3908_s11 }
  0xc0   : > { %3637 = vpow2.f32 %v3127_v48  ;;  %v4402_v61 = vadd.f32 %v4316_v11, %v410_v55  ;;  %v4405_v62 = vadd.f32 %v4316_v11, %v411_v56  ;;  %v3131_v3 = vmul.f32 -1.442695, %v4395_v58  ;;  %3298 = vmatpush3.bf16.msra.mxu1 %v3611_v25  ;;  %v3614_v56 = vld [vmem:[#allocation8 + $0x40] sm:$0xff]   ;;  %v3616_v25 = vld [vmem:[#allocation8 + $0x48] sm:$0xff]  }
  0xc1   : > { %3639 = vpow2.f32 %v3128_v49  ;;  %v3132_v4 = vmul.f32 -1.442695, %v4398_v59  ;;  %v412_v13 = vmul.f32 %v4308_v5, %v369_v60  ;;  %v1068_v16 = vand.u32 15, %v4321_v14  ;;  %3299 = vmatprep.subr.bf16.mxu1 %v3613_v44  ;;  %3342 = vmatpush3.bf16.msra.mxu0 %v3612_v31  ;;  %p3911_p3 = pneg %p3910_p10  ;;  %p3917_p6 = por %p3916_p13, %p3915_p11 }
  0xc2   : > { %3641 = vpow2.f32 %v3129_v54  ;;  %v3133_v10 = vmul.f32 -1.442695, %v4402_v61  ;;  %v3134_v12 = vmul.f32 -1.442695, %v4405_v62  ;;  %v1082_v20 = vand.u32 15, %v4324_v15  ;;  %3343 = vmatprep.subr.bf16.mxu0 %v3614_v56 }
  0xc3   : > { %3643 = vpow2.f32 %v3130_v57  ;;  %v413_v21 = vmul.f32 %v4308_v5, %v370_v0  ;;  %v1096_v27 = vand.u32 15, %v4330_v19  ;;  %v414_v30 = vmul.f32 %v4308_v5, %v371_v6  ;;  %p3918_p8 = pnand %p3917_p6, %p3911_p3 }
  0xc4   : > { %3645 = vpow2.f32 %v3131_v3  ;;  %v4427_v34 = vadd.f32 %v4316_v11, %v412_v13  ;;  %v4430_v37 = vadd.s32 120, %v4304_v2  ;;  %v1110_v42 = vand.u32 15, %v4335_v22  ;;  %3300 = vmatpush3.bf16.msra.mxu1 %v3613_v44 }
  0xc5   : > { %v3628_v26 = vpop.eup %3627  ;;  %3647 = vpow2.f32 %v3132_v4  ;;  %v1124_v43 = vand.u32 15, %v4376_v45  ;;  %v4436_v48 = vadd.f32 %v4316_v11, %v413_v21  ;;  %v415_v49 = vmul.f32 %v4308_v5, %v372_v17  ;;  %v374_v4 = vld [vmem:[%s4285_s13 + $0xa0] sm:$0xff]  ;;  %3344 = vmatpush3.bf16.msra.mxu0 %v3614_v56 }
  0xc6   : > { %v3630_v32 = vpop.eup %3629  ;;  %v588_v33 = vadd.f32 1.0, %v3628_v26  ;;  %3649 = vpow2.f32 %v3133_v10  ;;  %v4441_v55 = vadd.f32 %v4316_v11, %v414_v30  ;;  %v1138_v0 = vand.u32 15, %v4383_v50  ;;  %v3615_v10 = vld [vmem:[#allocation8 + $0x18] sm:$0xff]   ;;  %3345 = vmatprep.subr.bf16.mxu0 %v3616_v25 }
  0xc7   : > { %v3632_v38 = vpop.eup %3631  ;;  %v589_v41 = vadd.f32 1.0, %v3630_v32  ;;  %3651 = vpow2.f32 %v3134_v12  ;;  %v4445_v3 = vmul.f32 -1.442695, %v4427_v34  ;;  %v4449_v17 = vmul.f32 -1.442695, %v4436_v48  ;;  %3301 = vmatprep.subr.bf16.mxu1 %v3615_v10 }
  0xc8   : > { %v3634_v46 = vpop.eup %3633  ;;  %3653 = vrcp.f32 %v588_v33  ;;  %v586_v47 = vadd.f32 1.0, %v3632_v38  ;;  %v4452_v21 = vadd.f32 %v4316_v11, %v415_v49  ;;  %v4455_v31 = vmul.f32 -1.442695, %v4441_v55  ;;  %v375_v33 = vld [vmem:[%s4285_s13 + $0xa8] sm:$0xff]  ;;  %3302 = vmatpush3.bf16.msra.mxu1 %v3615_v10 }
  0xc9   : > { %v3636_v53 = vpop.eup %3635  ;;  %3655 = vrcp.f32 %v589_v41  ;;  %v587_v54 = vadd.f32 1.0, %v3634_v46  ;;  %v416_v32 = vmul.f32 %v4308_v5, %v373_v52  ;;  %v3617_v38 = vld [vmem:[#allocation8 + $0x20] sm:$0xff]   ;;  %vm1778_vm0 = vcmp.lt.s32.totalorder %v4304_v2, 7  ;;  %3346 = vmatpush3.bf16.msra.mxu0 %v3616_v25 }
  0xca   : > { %v3638_v57 = vpop.eup %3637  ;;  %3657 = vrcp.f32 %v586_v47  ;;  %v590_v60 = vadd.f32 1.0, %v3636_v53  ;;  %v1152_v44 = vand.u32 15, %v4408_v63  ;;  %v376_v47 = vld [vmem:[%s4285_s13 + $0xb0] sm:$0xff]  ;;  %vm4464_vm1 = vcmp.eq.s32.totalorder %v1068_v16, 15  ;;  %3303 = vmatprep.subr.bf16.mxu1 %v3617_v38 }
  0xcb   : > { %v3640_v6 = vpop.eup %3639  ;;  %3659 = vrcp.f32 %v587_v54  ;;  %v591_v9 = vadd.f32 1.0, %v3638_v57  ;;  %v417_v54 = vmul.f32 %v4308_v5, %v374_v4  ;;  %v377_v57 = vld [vmem:[%s4285_s13 + $0xb8] sm:$0xff]  ;;  %vm4472_vm2 = vcmp.eq.s32.totalorder %v1082_v20, 15 }
  0xcc   : > { %v3642_v12 = vpop.eup %3641  ;;  %3661 = vrcp.f32 %v590_v60  ;;  %v592_v13 = vadd.f32 1.0, %v3640_v6  ;;  %v3618_v60 = vld [vmem:[#allocation8 + $0x50] sm:$0xff]   ;;  %v1166_v16 = vand.u32 15, %v4430_v37  ;;  %v4478_v56 = vmul.f32 -1.442695, %v4452_v21  ;;  %3304 = vmatpush3.bf16.msra.mxu1 %v3617_v38 }
  0xcd   : > { %v3644_v26 = vpop.eup %3643  ;;  %3663 = vrcp.f32 %v591_v9  ;;  %v593_v30 = vadd.f32 1.0, %v3642_v12  ;;  %vm4482_vm3 = vcmp.eq.s32.totalorder %v1096_v27, 15  ;;  %v4487_v20 = vadd.f32 %v4316_v11, %v416_v32  ;;  %3347 = vmatprep.subr.bf16.mxu0 %v3618_v60 }
  0xce   : > { %v3646_v41 = vpop.eup %3645  ;;  %3665 = vrcp.f32 %v592_v13  ;;  %v594_v46 = vadd.f32 1.0, %v3644_v26  ;;  %v418_v13 = vmul.f32 %v4308_v5, %v375_v33  ;;  %v3619_v26 = vld [vmem:[#allocation8 + $0x28] sm:$0xff]   ;;  %v4491_v10 = vadd.s32 136, %v4304_v2  ;;  %v3620_v33 = vld [vmem:[#allocation8 + $0x58] sm:$0xff]   ;;  %3348 = vmatpush3.bf16.msra.mxu0 %v3618_v60 }
  0xcf   : > { %v3648_v49 = vpop.eup %3647  ;;  %3667 = vrcp.f32 %v593_v30  ;;  %v595_v52 = vadd.f32 1.0, %v3646_v41  ;;  %v419_v32 = vmul.f32 %v4308_v5, %v376_v47  ;;  %vm4505_vm4 = vcmp.eq.s32.totalorder %v1110_v42, 15  ;;  %3305 = vmatprep.subr.bf16.mxu1 %v3619_v26  ;;  %3349 = vmatprep.subr.bf16.mxu0 %v3620_v33 }
  0xd0   : > { %v3650_v6 = vpop.eup %3649  ;;  %3669 = vrcp.f32 %v594_v46  ;;  %v596_v14 = vadd.f32 1.0, %v3648_v49  ;;  %v4497_v46 = vadd.f32 %v4316_v11, %v417_v54  ;;  %v420_v54 = vmul.f32 %v4308_v5, %v377_v57  ;;  %3306 = vmatpush3.bf16.msra.mxu1 %v3619_v26 }
  0xd1   : > { %v3652_v12 = vpop.eup %3651  ;;  %3671 = vrcp.f32 %v595_v52  ;;  %v597_v15 = vadd.f32 1.0, %v3650_v6  ;;  %v4521_v22 = vadd.f32 %v4316_v11, %v418_v13  ;;  %vm4536_vm5 = vcmp.eq.s32.totalorder %v1124_v43, 15  ;;  %3427 = vmatprep.subr.bf16.mxu1 %v4419_v18 }
  0xd2   : > { %v3654_v30 = vpop.eup %3653  ;;  %3673 = vrcp.f32 %v596_v14  ;;  %v598_v41 = vadd.f32 1.0, %v3652_v12  ;;  %v4552_v43 = vadd.f32 %v4316_v11, %v420_v54  ;;  %3350 = vmatpush3.bf16.msra.mxu0 %v3620_v33  ;;  %vm4587_vm6 = vcmp.eq.s32.totalorder %v1138_v0, 15 }
  0xd3   : > { %v3656_v19 = vpop.eup %3655  ;;  %v4494_v27 = vmul.f32 %v3654_v30, %v4338_v23  ;;  %3675 = vrcp.f32 %v597_v15  ;;  %v4510_v23 = vadd.s32 152, %v4304_v2  ;;  %v3621_v30 = vld [vmem:[#allocation8 + $0x60] sm:$0xff]   ;;  %vm4618_vm7 = vcmp.eq.s32.totalorder %v1152_v44, 15 }
  0xd4   : > { %v3658_v49 = vpop.eup %3657  ;;  %v4501_v52 = vmul.f32 %v3656_v19, %v4341_v24  ;;  %3677 = vrcp.f32 %v598_v41  ;;  %v4518_v24 = vmul.f32 -1.442695, %v4487_v20  ;;  %3383 = vmatprep.subr.bf16.mxu0 %v3621_v30  ;;  %v3141_v25 = vmul.f32 -1.442695, %v4521_v22 }
  0xd5   : > { %v3660_v47 = vpop.eup %3659  ;;  %v4514_v6 = vmul.f32 %v3658_v49, %v4347_v28  ;;  %3679 = vpow2.f32 %v4445_v3  ;;  %v1746_v38 = vrot.slane %v4494_v27, 1  ;;  %vm4693_vm8 = vcmp.eq.s32.totalorder %v1166_v16, 15 }
  0xd6   : > { %v3662_v42 = vpop.eup %3661  ;;  %v1943_v14 = vpack.c.bf16 %v4501_v52, %v4494_v27  ;;  %v4526_v57 = vmul.f32 %v3660_v47, %v4350_v29  ;;  %v1747_v28 = vrot.slane %v4501_v52, 1  ;;  %3681 = vpow2.f32 %v4449_v17 }
  0xd7   : > { %v3664_v3 = vpop.eup %3663  ;;  %v1744_v12 = vrot.slane %v4514_v6, 1  ;;  %v4532_v15 = vmul.f32 %v3662_v42, %v4358_v35  ;;  %v4542_v29 = vadd.f32 %v4316_v11, %v419_v32  ;;  %3683 = vpow2.f32 %v4455_v31  ;;  %v378_v42 = vld [vmem:[%s4285_s13 + $0xc0] sm:$0xff] }
  0xd8   : > { %v3666_v60 = vpop.eup %3665  ;;  %1999 = vrot.lane.b32.xlu1 %v1943_v14, %s4010_s25  ;;  %v1942_v35 = vpack.c.bf16 %v4526_v57, %v4514_v6  ;;  %v1745_v41 = vrot.slane %v4526_v57, 1  ;;  %v4549_v45 = vmul.f32 %v3664_v3, %v4361_v36 }
  0xd9   : > { %v3668_v17 = vpop.eup %3667  ;;  %v1812_v19 = vsel %vm1778_vm0, %v4312_v8, %v1744_v12  ;;  %v1748_v32 = vrot.slane %v4532_v15, 1  ;;  %v4559_v49 = vmul.f32 %v3666_v60, %v4366_v39  ;;  %v1809_v39 = vsel %vm1778_vm0, %v1746_v38, %v1747_v28 }
  0xda   : > { %v3670_v36 = vpop.eup %3669  ;;  %1997 = vrot.lane.b32.xlu0 %v1942_v35, %s4010_s25  ;;  %v1888_v26 = vsel %vm4464_vm1, 0.0, %v1812_v19  ;;  %v1810_v54 = vsel %vm1778_vm0, %v1745_v41, %v1746_v38  ;;  %v1811_v47 = vsel %vm1778_vm0, %v1744_v12, %v1745_v41  ;;  %v4579_v3 = vmul.f32 %v3668_v17, %v4369_v40 }
  0xdb   : > { %v3672_v31 = vpop.eup %3671  ;;  %v1959_v18 = vpack.c.bf16 %v1888_v26, %v4312_v8  ;;  %v1890_v14 = vsel %vm4472_vm2, 0.0, %v1810_v54  ;;  %v1808_v53 = vsel %vm1778_vm0, %v1747_v28, %v1748_v32  ;;  %v1749_v33 = vrot.slane %v4549_v45, 1 }
  0xdc   : > { %v3674_v60 = vpop.eup %3673  ;;  %v1960_v12 = vpack.c.bf16 %v1890_v14, %v1811_v47  ;;  %v1892_v38 = vsel %vm4482_vm3, 0.0, %v1808_v53  ;;  %v1750_v35 = vrot.slane %v4559_v49, 1  ;;  %v4593_v30 = vmul.f32 %v3670_v36, %v4386_v51 }
  0xdd   : > { %v3676_v28 = vpop.eup %3675  ;;  %2049 = vrot.lane.b32.xlu1 %v1959_v18, %s4012_s24  ;;  %v1961_v40 = vpack.c.bf16 %v1892_v38, %v1809_v39  ;;  %v1751_v4 = vrot.slane %v4579_v3, 1  ;;  %v421_v41 = vmul.f32 %v4308_v5, %v378_v42  ;;  %v1944_v50 = vpack.c.bf16 %v4549_v45, %v4532_v15 }
  0xde   : > { %v3678_v17 = vpop.eup %3677  ;;  %2051 = vrot.lane.b32.xlu0 %v1960_v12, %s4012_s24  ;;  %v1806_v0 = vsel %vm1778_vm0, %v1749_v33, %v1750_v35  ;;  %v4603_v19 = vmul.f32 %v3672_v31, %v4395_v58  ;;  %v4606_v26 = vmul.f32 %v3674_v60, %v4398_v59  ;;  %v1807_v36 = vsel %vm1778_vm0, %v1748_v32, %v1749_v33 }
  0xdf   : > { %v3680_v51 = vpop.eup %3679  ;;  %v1894_v54 = vsel %vm4505_vm4, 0.0, %v1806_v0  ;;  %v1752_v47 = vrot.slane %v4593_v30, 1  ;;  %v4614_v39 = vmul.f32 %v3676_v28, %v4402_v61  ;;  %v3140_v32 = vmul.f32 -1.442695, %v4497_v46  ;;  %v381_v0 = vld [vmem:[%s4285_s13 + $0xd8] sm:$0xff] }
  0xe0   : > { %v1753_v59 = vrot.slane %v4603_v19, 1  ;;  %v1754_v42 = vrot.slane %v4606_v26, 1  ;;  %v3682_v31 = vpop.eup %3681  ;;  %v1945_v61 = vpack.c.bf16 %v4579_v3, %v4559_v49  ;;  %v4632_v44 = vmul.f32 %v3678_v17, %v4405_v62  ;;  %v379_v17 = vld [vmem:[%s4285_s13 + $0xc8] sm:$0xff] }
  0xe1   : > { %2053 = vrot.lane.b32.xlu1 %v1961_v40, %s4012_s24  ;;  %v1804_v63 = vsel %vm1778_vm0, %v1751_v4, %v1752_v47  ;;  %v3142_v18 = vmul.f32 -1.442695, %v4542_v29  ;;  %v1962_v14 = vpack.c.bf16 %v1894_v54, %v1807_v36  ;;  %v1805_v53 = vsel %vm1778_vm0, %v1750_v35, %v1751_v4  ;;  %v3684_v38 = vpop.eup %3683 }
  0xe2   : > { %2001 = vrot.lane.b32.xlu0 %v1944_v50, %s4010_s25  ;;  %v1896_v60 = vsel %vm4536_vm5, 0.0, %v1804_v63  ;;  %v599_v12 = vadd.f32 1.0, %v3680_v51  ;;  %v1755_v33 = vrot.slane %v4614_v39, 1  ;;  %v1756_v28 = vrot.slane %v4632_v44, 1  ;;  %v380_v50 = vld [vmem:[%s4285_s13 + $0xd0] sm:$0xff]  ;;  %v382_v63 = vld [vmem:[%s4285_s13 + $0xe0] sm:$0xff] }
  0xe3   : > { %v3143_v62 = vmul.f32 -1.442695, %v4552_v43  ;;  %v4644_v40 = vadd.f32 %v4316_v11, %v421_v41  ;;  %v1802_v35 = vsel %vm1778_vm0, %v1753_v59, %v1754_v42  ;;  %v600_v13 = vadd.f32 1.0, %v3682_v31 }
  0xe4   : > { %3685 = vrcp.f32 %v599_v12  ;;  %v601_v4 = vadd.f32 1.0, %v3684_v38  ;;  %v1963_v51 = vpack.c.bf16 %v1896_v60, %v1805_v53  ;;  %v1946_v36 = vpack.c.bf16 %v4603_v19, %v4593_v30 }
  0xe5   : > { %2003 = vrot.lane.b32.xlu1 %v1945_v61, %s4010_s25  ;;  %v1947_v41 = vpack.c.bf16 %v4614_v39, %v4606_v26  ;;  %3687 = vpow2.f32 %v4478_v56  ;;  %v1803_v54 = vsel %vm1778_vm0, %v1752_v47, %v1753_v59  ;;  %v422_v31 = vmul.f32 %v4308_v5, %v379_v17  ;;  %v383_v17 = vld [vmem:[%s4285_s13 + $0xe8] sm:$0xff] }
  0xe6   : > { %2055 = vrot.lane.b32.xlu0 %v1962_v14, %s4012_s24  ;;  %3689 = vrcp.f32 %v600_v13  ;;  %v423_v61 = vmul.f32 %v4308_v5, %v380_v50  ;;  %v1898_v53 = vsel %vm4587_vm6, 0.0, %v1802_v35  ;;  %v1800_v56 = vsel %vm1778_vm0, %v1755_v33, %v1756_v28 }
  0xe7   : > { %3691 = vrcp.f32 %v601_v4  ;;  %v424_v14 = vmul.f32 %v4308_v5, %v381_v0  ;;  %v1801_v47 = vsel %vm1778_vm0, %v1754_v42, %v1755_v33  ;;  %v4674_v59 = vadd.f32 %v4316_v11, %v422_v31  ;;  %v384_v42 = vld [vmem:[%s4285_s13 + $0xf0] sm:$0xff] }
  0xe8   : > { %3693 = vpow2.f32 %v4518_v24  ;;  %v4677_v60 = vadd.f32 %v4316_v11, %v423_v61  ;;  %v3144_v9 = vmul.f32 -1.442695, %v4644_v40  ;;  %v425_v38 = vmul.f32 %v4308_v5, %v382_v63  ;;  %v385_v63 = vld [vmem:[%s4285_s13 + $0xf8] sm:$0xff] }
  0xe9   : > { %2057 = vrot.lane.b32.xlu1 %v1963_v51, %s4012_s24  ;;  %3695 = vpow2.f32 %v3140_v32  ;;  %v4682_v12 = vadd.f32 %v4316_v11, %v424_v14  ;;  %v1964_v24 = vpack.c.bf16 %v1898_v53, %v1803_v54  ;;  %v1900_v33 = vsel %vm4618_vm7, 0.0, %v1800_v56 }
  0xea   : > { %2005 = vrot.lane.b32.xlu0 %v1946_v36, %s4010_s25  ;;  %3697 = vpow2.f32 %v3141_v25  ;;  %v3145_v50 = vmul.f32 -1.442695, %v4674_v59  ;;  %v4698_v35 = vadd.s32 168, %v4304_v2  ;;  %v3146_v13 = vmul.f32 -1.442695, %v4677_v60 }
  0xeb   : > { %3699 = vpow2.f32 %v3142_v18  ;;  %v4702_v4 = vadd.f32 %v4316_v11, %v425_v38  ;;  %v3147_v58 = vmul.f32 -1.442695, %v4682_v12  ;;  %v426_v25 = vmul.f32 %v4308_v5, %v383_v17 }
  0xec   : > { %3701 = vpow2.f32 %v3143_v62  ;;  %v427_v37 = vmul.f32 %v4308_v5, %v384_v42  ;;  %v1965_v16 = vpack.c.bf16 %v1900_v33, %v1801_v47  ;;  %v1180_v18 = vand.u32 15, %v4491_v10 }
  0xed   : > { %2007 = vrot.lane.b32.xlu1 %v1947_v41, %s4010_s25  ;;  %3703 = vpow2.f32 %v3144_v9  ;;  %v3148_v0 = vmul.f32 -1.442695, %v4702_v4  ;;  %v1194_v62 = vand.u32 15, %v4510_v23  ;;  %v4713_v36 = vadd.f32 %v4316_v11, %v426_v25 }
  0xee   : > { %v3686_v51 = vpop.eup %3685  ;;  %2059 = vrot.lane.b32.xlu0 %v1964_v24, %s4012_s24  ;;  %3705 = vpow2.f32 %v3145_v50  ;;  %v4716_v54 = vadd.f32 %v4316_v11, %v427_v37  ;;  %v1529_v31 = vrot.slane %v4494_v27, 7  ;;  %v1208_v61 = vand.u32 15, %v4698_v35 }
  0xef   : > { %v3688_v41 = vpop.eup %3687  ;;  %v4720_v10 = vmul.f32 %v3686_v51, %v4427_v34  ;;  %3707 = vpow2.f32 %v3146_v13  ;;  %v3149_v14 = vmul.f32 -1.442695, %v4713_v36  ;;  %v4737_v33 = vadd.s32 184, %v4304_v2  ;;  %v386_v51 = vld [vmem:[%s4285_s13 + $0x100] sm:$0xff] }
  0xf0   : > { %v3690_v53 = vpop.eup %3689  ;;  %v602_v56 = vadd.f32 1.0, %v3688_v41  ;;  %3709 = vpow2.f32 %v3147_v58  ;;  %v3150_v47 = vmul.f32 -1.442695, %v4716_v54  ;;  %v428_v50 = vmul.f32 %v4308_v5, %v385_v63 }
  0xf1   : > { %v3692_v9 = vpop.eup %3691  ;;  %2061 = vrot.lane.b32.xlu1 %v1965_v16, %s4012_s24  ;;  %v1948_v38 = vpack.c.bf16 %v4720_v10, %v4632_v44  ;;  %v4730_v34 = vmul.f32 %v3690_v53, %v4436_v48  ;;  %v1757_v17 = vrot.slane %v4720_v10, 1  ;;  %3711 = vpow2.f32 %v3148_v0 }
  0xf2   : > { %v3694_v42 = vpop.eup %3693  ;;  %v4734_v24 = vmul.f32 %v3692_v9, %v4441_v55  ;;  %3713 = vrcp.f32 %v602_v56  ;;  %v4743_v25 = vadd.s32 200, %v4304_v2  ;;  %v1530_v63 = vrot.slane %v4501_v52, 7 }
  0xf3   : > { %v3696_v13 = vpop.eup %3695  ;;  %2009 = vrot.lane.b32.xlu0 %v1948_v38, %s4010_s25  ;;  %v1758_v48 = vrot.slane %v4730_v34, 1  ;;  %v603_v58 = vadd.f32 1.0, %v3694_v42  ;;  %3715 = vpow2.f32 %v3149_v14  ;;  %v1799_v16 = vsel %vm1778_vm0, %v1756_v28, %v1757_v17  ;;  %v387_v38 = vld [vmem:[%s4285_s13 + $0x108] sm:$0xff] }
  0xf4   : > { %v3698_v37 = vpop.eup %3697  ;;  %v1949_v55 = vpack.c.bf16 %v4734_v24, %v4730_v34  ;;  %v604_v0 = vadd.f32 1.0, %v3696_v13  ;;  %3717 = vpow2.f32 %v3150_v47  ;;  %v4761_v47 = vadd.f32 %v4316_v11, %v428_v50 }
  0xf5   : > { %v3700_v41 = vpop.eup %3699  ;;  %v1798_v53 = vsel %vm1778_vm0, %v1757_v17, %v1758_v48  ;;  %3719 = vrcp.f32 %v603_v58  ;;  %v605_v56 = vadd.f32 1.0, %v3698_v37  ;;  %vm4764_vm9 = vcmp.eq.s32.totalorder %v1180_v18, 15 }
  0xf6   : > { %v3702_v14 = vpop.eup %3701  ;;  %2011 = vrot.lane.b32.xlu1 %v1949_v55, %s4010_s25  ;;  %v1902_v9 = vsel %vm4693_vm8, 0.0, %v1798_v53  ;;  %3721 = vrcp.f32 %v604_v0  ;;  %v606_v28 = vadd.f32 1.0, %v3700_v41  ;;  %v429_v58 = vmul.f32 %v4308_v5, %v386_v51 }
  0xf7   : > { %v3704_v42 = vpop.eup %3703  ;;  %v1966_v13 = vpack.c.bf16 %v1902_v9, %v1799_v16  ;;  %3723 = vrcp.f32 %v605_v56  ;;  %v607_v17 = vadd.f32 1.0, %v3702_v14  ;;  %v1222_v55 = vand.u32 15, %v4737_v33 }
  0xf8   : > { %v3706_v37 = vpop.eup %3705  ;;  %3725 = vrcp.f32 %v606_v28  ;;  %v608_v32 = vadd.f32 1.0, %v3704_v42  ;;  %v1236_v0 = vand.u32 15, %v4743_v25  ;;  %v4773_v18 = vadd.s32 216, %v4304_v2 }
  0xf9   : > { %v3708_v50 = vpop.eup %3707  ;;  %2063 = vrot.lane.b32.xlu0 %v1966_v13, %s4012_s24  ;;  %3727 = vrcp.f32 %v607_v17  ;;  %v609_v16 = vadd.f32 1.0, %v3706_v37  ;;  %v430_v41 = vmul.f32 %v4308_v5, %v387_v38  ;;  %v1759_v51 = vrot.slane %v4734_v24, 1 }
  0xfa   : > { %v3710_v53 = vpop.eup %3709  ;;  %3729 = vrcp.f32 %v608_v32  ;;  %v610_v56 = vadd.f32 1.0, %v3708_v50  ;;  %v4778_v14 = vadd.s32 232, %v4304_v2  ;;  %vm4782_vm10 = vcmp.eq.s32.totalorder %v1194_v62, 15 }
  0xfb   : > { %v3712_v33 = vpop.eup %3711  ;;  %3731 = vrcp.f32 %v609_v16  ;;  %v611_v9 = vadd.f32 1.0, %v3710_v53  ;;  %v3151_v28 = vmul.f32 -1.442695, %v4761_v47  ;;  %v4788_v5 = vadd.f32 %v4316_v11, %v429_v58 }
  0xfc   : > { %v3714_v38 = vpop.eup %3713  ;;  %3733 = vrcp.f32 %v610_v56  ;;  %v612_v42 = vadd.f32 1.0, %v3712_v33  ;;  %v4791_v13 = vadd.s32 248, %v4304_v2  ;;  %v4794_v17 = vadd.s32 264, %v4304_v2 }
  0xfd   : > { %v3716_v23 = vpop.eup %3715  ;;  %v4797_v62 = vmul.f32 %v3714_v38, %v4452_v21  ;;  %vm4801_vm11 = vcmp.eq.s32.totalorder %v1208_v61, 15  ;;  %3735 = vrcp.f32 %v611_v9  ;;  %v1250_v58 = vand.u32 15, %v4773_v18 }
  0xfe   : > { %v4807_v32 = vadd.f32 %v4316_v11, %v430_v41  ;;  %v3718_v50 = vpop.eup %3717  ;;  %v1797_v16 = vsel %vm1778_vm0, %v1758_v48, %v1759_v51  ;;  %3737 = vrcp.f32 %v612_v42  ;;  %v613_v21 = vadd.f32 1.0, %v3716_v23 }
  0xff   : > { %v1264_v35 = vand.u32 15, %v4778_v14  ;;  %v3720_v61 = vpop.eup %3719  ;;  %v1760_v53 = vrot.slane %v4797_v62, 1  ;;  %vm4815_vm12 = vcmp.eq.s32.totalorder %v1222_v55, 15  ;;  %3739 = vpow2.f32 %v3151_v28 }
 0x100   : > { %v614_v11 = vadd.f32 1.0, %v3718_v50  ;;  %v3152_v18 = vmul.f32 -1.442695, %v4788_v5  ;;  %v3722_v41 = vpop.eup %3721  ;;  %v4821_v33 = vmul.f32 %v3720_v61, %v4487_v20  ;;  %3741 = vrcp.f32 %v613_v21 }
 0x101   : > { %v3724_v9 = vpop.eup %3723  ;;  %v1796_v55 = vsel %vm1778_vm0, %v1759_v51, %v1760_v53  ;;  %v4828_v38 = vmul.f32 %v3722_v41, %v4497_v46  ;;  %v3153_v28 = vmul.f32 -1.442695, %v4807_v32  ;;  %vm4839_vm13 = vcmp.eq.s32.totalorder %v1236_v0, 15 }
 0x102   : > { %3743 = vrcp.f32 %v614_v11  ;;  %v3726_v42 = vpop.eup %3725  ;;  %v1904_v20 = vsel %vm4764_vm9, 0.0, %v1796_v55  ;;  %v1950_v23 = vpack.c.bf16 %v4821_v33, %v4797_v62  ;;  %v1761_v50 = vrot.slane %v4821_v33, 1 }
 0x103   : > { %v4837_v21 = vmul.f32 %v3724_v9, %v4521_v22  ;;  %v3728_v46 = vpop.eup %3727  ;;  %v1967_v61 = vpack.c.bf16 %v1904_v20, %v1797_v16  ;;  %v1762_v11 = vrot.slane %v4828_v38, 1  ;;  %v4845_v41 = vmul.f32 %v3726_v42, %v4542_v29 }
 0x104   : > { %3745 = vpow2.f32 %v3152_v18  ;;  %v3730_v1 = vpop.eup %3729  ;;  %2013 = vrot.lane.b32.xlu0 %v1950_v23, %s4010_s25  ;;  %v1795_v55 = vsel %vm1778_vm0, %v1760_v53, %v1761_v50  ;;  %v4853_v0 = vmul.f32 %v3728_v46, %v4552_v43  ;;  %vm4868_vm14 = vcmp.eq.s32.totalorder %v1250_v58, 15 }
 0x105   : > { %v1951_v22 = vpack.c.bf16 %v4837_v21, %v4828_v38  ;;  %v1763_v16 = vrot.slane %v4837_v21, 1  ;;  %v3732_v9 = vpop.eup %3731  ;;  %2065 = vrot.lane.b32.xlu1 %v1967_v61, %s4012_s24  ;;  %v1794_v29 = vsel %vm1778_vm0, %v1761_v50, %v1762_v11  ;;  %v1764_v18 = vrot.slane %v4845_v41, 1 }
 0x106   : > { %v4861_v42 = vmul.f32 %v3730_v1, %v4644_v40  ;;  %3747 = vpow2.f32 %v3153_v28  ;;  %v3734_v53 = vpop.eup %3733  ;;  %v1906_v20 = vsel %vm4782_vm10, 0.0, %v1794_v29  ;;  %v1765_v23 = vrot.slane %v4853_v0, 1 }
 0x107   : > { %v1793_v43 = vsel %vm1778_vm0, %v1762_v11, %v1763_v16  ;;  %vm4872_vm15 = vcmp.eq.s32.totalorder %v1264_v35, 15  ;;  %v764_v40 = vadd.s32 280, %v4304_v2  ;;  %v3736_v28 = vpop.eup %3735  ;;  %v1968_v61 = vpack.c.bf16 %v1906_v20, %v1795_v55 }
 0x108   : > { %v1792_v25 = vsel %vm1778_vm0, %v1763_v16, %v1764_v18  ;;  %v1766_v1 = vrot.slane %v4861_v42, 1  ;;  %v4881_v11 = vmul.f32 %v3732_v9, %v4674_v59  ;;  %v3738_v58 = vpop.eup %3737  ;;  %2015 = vrot.lane.b32.xlu0 %v1951_v22, %s4010_s25  ;;  %v4887_v29 = vmul.f32 %v3734_v53, %v4677_v60 }
 0x109   : > { %v1908_v35 = vsel %vm4801_vm11, 0.0, %v1792_v25  ;;  %v4890_v14 = vmul.f32 %v3736_v28, %v4682_v12  ;;  %v733_v55 = vadd.s32 32, %v4304_v2  ;;  %v3740_v16 = vpop.eup %3739  ;;  %2067 = vrot.lane.b32.xlu1 %v1968_v61, %s4012_s24  ;;  %v1952_v59 = vpack.c.bf16 %v4853_v0, %v4845_v41 }
 0x10a   : > { %v1969_v9 = vpack.c.bf16 %v1908_v35, %v1793_v43  ;;  %v1790_v22 = vsel %vm1778_vm0, %v1765_v23, %v1766_v1  ;;  %v1767_v37 = vrot.slane %v4881_v11, 1  ;;  %v3742_v20 = vpop.eup %3741  ;;  %v1791_v60 = vsel %vm1778_vm0, %v1764_v18, %v1765_v23 }
 0x10b   : > { %v1910_v12 = vsel %vm4815_vm12, 0.0, %v1790_v22  ;;  %v1768_v53 = vrot.slane %v4887_v29, 1  ;;  %v4905_v28 = vmul.f32 %v3738_v58, %v4702_v4  ;;  %v1953_v43 = vpack.c.bf16 %v4881_v11, %v4861_v42 }
 0x10c   : > { %v3744_v61 = vpop.eup %3743  ;;  %v1769_v25 = vrot.slane %v4890_v14, 1  ;;  %v4911_v35 = vmul.f32 %v3742_v20, %v4713_v36  ;;  %v1306_v48 = vand.u32 15, %v764_v40  ;;  %2069 = vrot.lane.b32.xlu0 %v1969_v9, %s4012_s24  ;;  %v615_v23 = vadd.f32 1.0, %v3740_v16 }
 0x10d   : > { %v1788_v56 = vsel %vm1778_vm0, %v1767_v37, %v1768_v53  ;;  %v1770_v18 = vrot.slane %v4905_v28, 1  ;;  %v4918_v4 = vmul.f32 %v3744_v61, %v4716_v54  ;;  %2017 = vrot.lane.b32.xlu1 %v1952_v59, %s4010_s25  ;;  %v1970_v22 = vpack.c.bf16 %v1910_v12, %v1791_v60 }
 0x10e   : > { %v3746_v58 = vpop.eup %3745  ;;  %v1789_v36 = vsel %vm1778_vm0, %v1766_v1, %v1767_v37  ;;  %v1912_v40 = vsel %vm4839_vm13, 0.0, %v1788_v56  ;;  %v1771_v9 = vrot.slane %v4911_v35, 1  ;;  %3749 = vrcp.f32 %v615_v23 }
 0x10f   : > { %v1786_v20 = vsel %vm1778_vm0, %v1769_v25, %v1770_v18  ;;  %v1772_v16 = vrot.slane %v4918_v4, 1  ;;  %v1089_v54 = vand.u32 15, %v733_v55  ;;  %v1954_v59 = vpack.c.bf16 %v4890_v14, %v4887_v29 }
 0x110   : > { %v3748_v61 = vpop.eup %3747  ;;  %v1787_v60 = vsel %vm1778_vm0, %v1768_v53, %v1769_v25  ;;  %v616_v1 = vadd.f32 1.0, %v3746_v58  ;;  %vm4933_vm1 = vcmp.eq.s32.totalorder %v1306_v48, 15  ;;  %2019 = vrot.lane.b32.xlu0 %v1953_v43, %s4010_s25  ;;  %v1971_v37 = vpack.c.bf16 %v1912_v40, %v1789_v36 }
 0x111   : > { %v1955_v12 = vpack.c.bf16 %v4911_v35, %v4905_v28  ;;  %v1784_v55 = vsel %vm1778_vm0, %v1771_v9, %v1772_v16  ;;  %v617_v56 = vadd.f32 1.0, %v3748_v61  ;;  %2071 = vrot.lane.b32.xlu1 %v1970_v22, %s4012_s24  ;;  %v1914_v48 = vsel %vm4868_vm14, 0.0, %v1786_v20 }
 0x112   : > { %v1785_v53 = vsel %vm1778_vm0, %v1770_v18, %v1771_v9  ;;  %v1916_v43 = vsel %vm4872_vm15, 0.0, %v1784_v55  ;;  %3751 = vrcp.f32 %v616_v1  ;;  %v1922_v25 = vsel %vm4933_vm1, 0.0, %v4312_v8 }
 0x113   : > { %3753 = vrcp.f32 %v617_v56  ;;  %vm4954_vm2 = vcmp.eq.s32.totalorder %v1089_v54, 0  ;;  %vm1561_vm3 = vcmp.lt.s32.totalorder %v4304_v2, 1  ;;  %v1528_v46 = vrot.slane %v4526_v57, 7 }
 0x114   : > { %v1592_v50 = vsel %vm1561_vm3, %v1529_v31, %v1530_v63  ;;  %v731_v18 = vadd.s32 16, %v4304_v2  ;;  %v1527_v58 = vrot.slane %v4514_v6, 7  ;;  %2073 = vrot.lane.b32.xlu0 %v1971_v37, %s4012_s24  ;;  %v1972_v22 = vpack.c.bf16 %v1914_v48, %v1787_v60 }
 0x115   : > { %v1973_v36 = vpack.c.bf16 %v1916_v43, %v1785_v53  ;;  %v735_v40 = vadd.s32 48, %v4304_v2  ;;  %v1531_v9 = vrot.slane %v4532_v15, 7  ;;  %2021 = vrot.lane.b32.xlu1 %v1954_v59, %s4010_s25  ;;  %v1593_v57 = vsel %vm1561_vm3, %v1528_v46, %v1529_v31 }
 0x116   : > { %v1075_v20 = vand.u32 15, %v731_v18  ;;  %v1594_v54 = vsel %vm1561_vm3, %v1527_v58, %v1528_v46  ;;  %v1595_v6 = vsel %vm1561_vm3, %v4310_v7, %v1527_v58  ;;  %v5533_v61 = vand.u32 15, %v4791_v13 }
 0x117   : > { %v1674_v27 = vsel %vm4954_vm2, 0.0, %v1593_v57  ;;  %v1103_v15 = vand.u32 15, %v735_v40  ;;  %v1532_v31 = vrot.slane %v4549_v45, 7  ;;  %v1591_v59 = vsel %vm1561_vm3, %v1530_v63, %v1531_v9 }
 0x118   : > { %vm4983_vm4 = vcmp.eq.s32.totalorder %v5533_v61, 15  ;;  %v5536_v1 = vand.u32 15, %v4794_v17  ;;  %v5000_v13 = vpack.c.bf16 %v1592_v50, %v1674_v27  ;;  %vm1491_vm6 = vcmp.eq.s32.totalorder %v1075_v20, 0  ;;  %v3750_v48 = vpop.eup %3749  ;;  %2023 = vrot.lane.b32.xlu0 %v1955_v12, %s4010_s25 }
 0x119   : > { %v737_v55 = vadd.s32 64, %v4304_v2  ;;  %v1533_v56 = vrot.slane %v4559_v49, 7  ;;  %v1672_v52 = vsel %vm1491_vm6, 0.0, %v1595_v6  ;;  %vm1495_vm7 = vcmp.eq.s32.totalorder %v1103_v15, 0  ;;  %2075 = vrot.lane.b32.xlu1 %v1972_v22, %s4012_s24 }
 0x11a   : > { %vm4996_vm5 = vcmp.eq.s32.totalorder %v5536_v1, 15  ;;  %v1590_v45 = vsel %vm1561_vm3, %v1531_v9, %v1532_v31  ;;  %v1534_v63 = vrot.slane %v4579_v3, 7  ;;  %v5010_v17 = vmul.f32 %v3750_v48, %v4761_v47 }
 0x11b   : > { %v5012_v53 = vpack.c.bf16 %v1594_v54, %v1672_v52  ;;  %v1676_v43 = vsel %vm1495_vm7, 0.0, %v1591_v59  ;;  %v1117_v23 = vand.u32 15, %v737_v55  ;;  %v1589_v46 = vsel %vm1561_vm3, %v1532_v31, %v1533_v56 }
 0x11c   : > { %v5014_v49 = vpack.c.bf16 %v1590_v45, %v1676_v43  ;;  %v1588_v12 = vsel %vm1561_vm3, %v1533_v56, %v1534_v63  ;;  %v739_v50 = vadd.s32 80, %v4304_v2  ;;  %v3752_v3 = vpop.eup %3751  ;;  %v1956_v18 = vpack.c.bf16 %v5010_v17, %v4918_v4  ;;  %2077 = vrot.lane.b32.xlu0 %v1973_v36, %s4012_s24 }
 0x11d   : > { %v1773_v47 = vrot.slane %v5010_v17, 1  ;;  %vm1497_vm8 = vcmp.eq.s32.totalorder %v1117_v23, 0  ;;  %v1535_v58 = vrot.slane %v4593_v30, 7  ;;  %v3754_v22 = vpop.eup %3753  ;;  %v5027_v40 = vmul.f32 %v3752_v3, %v4788_v5 }
 0x11e   : > { %v1678_v9 = vsel %vm1497_vm8, 0.0, %v1589_v46  ;;  %v1131_v57 = vand.u32 15, %v739_v50  ;;  %v1536_v20 = vrot.slane %v4603_v19, 7  ;;  %2025 = vrot.lane.b32.xlu1 %v1956_v18, %s4010_s25  ;;  %v5036_v6 = vmul.f32 %v3754_v22, %v4807_v32 }
 0x11f   : > { %v1783_v54 = vsel %vm1778_vm0, %v1772_v16, %v1773_v47  ;;  %v5038_v30 = vpack.c.bf16 %v1588_v12, %v1678_v9  ;;  %v1587_v5 = vsel %vm1561_vm3, %v1534_v63, %v1535_v58  ;;  %v1774_v36 = vrot.slane %v5027_v40, 1 }
 0x120   : > { %vm1499_vm9 = vcmp.eq.s32.totalorder %v1131_v57, 0  ;;  %v1586_v19 = vsel %vm1561_vm3, %v1535_v58, %v1536_v20  ;;  %v741_v61 = vadd.s32 96, %v4304_v2  ;;  %v1957_v27 = vpack.c.bf16 %v5036_v6, %v5027_v40 }
 0x121   : > { %v1775_v16 = vrot.slane %v5036_v6, 1  ;;  %v1680_v32 = vsel %vm1499_vm9, 0.0, %v1587_v5  ;;  %v1537_v15 = vrot.slane %v4606_v26, 7  ;;  %v1782_v31 = vsel %vm1778_vm0, %v1773_v47, %v1774_v36 }
 0x122   : > { %v5052_v59 = vpack.c.bf16 %v1586_v19, %v1680_v32  ;;  %v1145_v1 = vand.u32 15, %v741_v61  ;;  %v1538_v55 = vrot.slane %v4614_v39, 7  ;;  %v1918_v56 = vsel %vm4983_vm4, 0.0, %v1782_v31  ;;  %2027 = vrot.lane.b32.xlu0 %v1957_v27, %s4010_s25 }
 0x123   : > { %v1780_v48 = vsel %vm1778_vm0, %v1775_v16, %v4312_v8  ;;  %v1781_v26 = vsel %vm1778_vm0, %v1774_v36, %v1775_v16  ;;  %v1976_v52 = vpack.c.bf16 %v1922_v25, %v4312_v8  ;;  %v1974_v45 = vpack.c.bf16 %v1918_v56, %v1783_v54 }
 0x124   : > { %v1920_v39 = vsel %vm4996_vm5, 0.0, %v1780_v48  ;;  %vm1501_vm10 = vcmp.eq.s32.totalorder %v1145_v1, 0  ;;  %v1584_v60 = vsel %vm1561_vm3, %v1537_v15, %v1538_v55  ;;  %v1585_v43 = vsel %vm1561_vm3, %v1536_v20, %v1537_v15 }
 0x125   : > { %v1975_v63 = vpack.c.bf16 %v1920_v39, %v1781_v26  ;;  %v743_v23 = vadd.s32 112, %v4304_v2  ;;  %v1539_v12 = vrot.slane %v4632_v44, 7  ;;  %2079 = vrot.lane.b32.xlu1 %v1974_v45, %s4012_s24  ;;  %v1682_v51 = vsel %vm1501_vm10, 0.0, %v1585_v43 }
 0x126   : > { %v1540_v8 = vrot.slane %v4720_v10, 7  ;;  %v745_v25 = vadd.s32 128, %v4304_v2  ;;  %v1541_v37 = vrot.slane %v4730_v34, 7  ;;  %v5081_v46 = vpack.c.bf16 %v1584_v60, %v1682_v51 }
 0x127   : > { %2081 = vrot.lane.b32.xlu0 %v1975_v63, %s4012_s24  ;;  %v1159_v50 = vand.u32 15, %v743_v23  ;;  %v1583_v3 = vsel %vm1561_vm3, %v1538_v55, %v1539_v12  ;;  %v1542_v18 = vrot.slane %v4734_v24, 7  ;;  %v747_v58 = vadd.s32 144, %v4304_v2 }
 0x128   : > { %v1582_v44 = vsel %vm1561_vm3, %v1539_v12, %v1540_v8  ;;  %v1173_v47 = vand.u32 15, %v745_v25  ;;  %v1581_v10 = vsel %vm1561_vm3, %v1540_v8, %v1541_v37  ;;  %v1543_v22 = vrot.slane %v4797_v62, 7 }
 0x129   : > { %vm1503_vm0 = vcmp.eq.s32.totalorder %v1159_v50, 0  ;;  %v1580_v34 = vsel %vm1561_vm3, %v1541_v37, %v1542_v18  ;;  %v1544_v9 = vrot.slane %v4821_v33, 7  ;;  %v5539_v57 = vmov 0.0|0.0  }
 0x12a   : > { %2029 = vrot.lane.b32.xlu1 %v5539_v57, %s4010_s25  ;;  %v1684_v24 = vsel %vm1503_vm0, 0.0, %v1583_v3  ;;  %vm1505_vm11 = vcmp.eq.s32.totalorder %v1173_v47, 0  ;;  %v1187_v20 = vand.u32 15, %v747_v58  ;;  %v749_v54 = vadd.s32 160, %v4304_v2 }
 0x12b   : > { %v5098_v5 = vpack.c.bf16 %v1582_v44, %v1684_v24  ;;  %v1686_v36 = vsel %vm1505_vm11, 0.0, %v1581_v10  ;;  %v1578_v19 = vsel %vm1561_vm3, %v1543_v22, %v1544_v9  ;;  %v1579_v61 = vsel %vm1561_vm3, %v1542_v18, %v1543_v22 }
 0x12c   : > { %v5104_v62 = vpack.c.bf16 %v1580_v34, %v1686_v36  ;;  %vm1507_vm12 = vcmp.eq.s32.totalorder %v1187_v20, 0  ;;  %v1201_v33 = vand.u32 15, %v749_v54  ;;  %v1545_v27 = vrot.slane %v4828_v38, 7 }
 0x12d   : > { %v1688_v16 = vsel %vm1507_vm12, 0.0, %v1579_v61  ;;  %v1546_v32 = vrot.slane %v4837_v21, 7  ;;  %v751_v15 = vadd.s32 176, %v4304_v2  ;;  %v1547_v31 = vrot.slane %v4845_v41, 7 }
 0x12e   : > { %2083 = vrot.lane.b32.xlu1 %v1976_v52, %s4012_s24  ;;  %v5111_v1 = vpack.c.bf16 %v1578_v19, %v1688_v16  ;;  %vm1509_vm13 = vcmp.eq.s32.totalorder %v1201_v33, 0  ;;  %v1577_v55 = vsel %vm1561_vm3, %v1544_v9, %v1545_v27  ;;  %v1548_v56 = vrot.slane %v4853_v0, 7 }
 0x12f   : > { %v1576_v38 = vsel %vm1561_vm3, %v1545_v27, %v1546_v32  ;;  %v1690_v48 = vsel %vm1509_vm13, 0.0, %v1577_v55  ;;  %v1215_v26 = vand.u32 15, %v751_v15  ;;  %v1575_v21 = vsel %vm1561_vm3, %v1546_v32, %v1547_v31 }
 0x130   : > { %v5120_v45 = vpack.c.bf16 %v1576_v38, %v1690_v48  ;;  %v1574_v41 = vsel %vm1561_vm3, %v1547_v31, %v1548_v56  ;;  %v753_v52 = vadd.s32 192, %v4304_v2  ;;  %v1549_v39 = vrot.slane %v4861_v42, 7  ;;  %v1996_v48 = vpop.permute.xlu0 %1995 }
 0x131   : > { %vm1511_vm14 = vcmp.eq.s32.totalorder %v1215_v26, 0  ;;  %v1550_v0 = vrot.slane %v4881_v11, 7  ;;  %v755_v60 = vadd.s32 208, %v4304_v2  ;;  %v1551_v63 = vrot.slane %v4887_v29, 7 }
 0x132   : > { %v1692_v43 = vsel %vm1511_vm14, 0.0, %v1575_v21  ;;  %v1229_v23 = vand.u32 15, %v753_v52  ;;  %v1573_v12 = vsel %vm1561_vm3, %v1548_v56, %v1549_v39  ;;  %v1552_v51 = vrot.slane %v4890_v14, 7 }
 0x133   : > { %v5132_v8 = vpack.c.bf16 %v1574_v41, %v1692_v43  ;;  %v1572_v25 = vsel %vm1561_vm3, %v1549_v39, %v1550_v0  ;;  %v1243_v42 = vand.u32 15, %v755_v60  ;;  %v1571_v11 = vsel %vm1561_vm3, %v1550_v0, %v1551_v63 }
 0x134   : > { %vm1513_vm15 = vcmp.eq.s32.totalorder %v1229_v23, 0  ;;  %v1570_v29 = vsel %vm1561_vm3, %v1551_v63, %v1552_v51  ;;  %v757_v37 = vadd.s32 224, %v4304_v2  ;;  %v1553_v50 = vrot.slane %v4905_v28, 7 }
 0x135   : > { %v1694_v3 = vsel %vm1513_vm15, 0.0, %v1573_v12  ;;  %vm1515_vm1 = vcmp.eq.s32.totalorder %v1243_v42, 0  ;;  %v1554_v14 = vrot.slane %v4911_v35, 7  ;;  %v759_v18 = vadd.s32 240, %v4304_v2  ;;  %v3622_v12 = vld [vmem:[#allocation8 + $0x68] sm:$0xff]   ;;  %v3756_v42 = vld [vmem:[#allocation8 + $0x38] sm:$0xff]  }
 0x136   : > { %v5144_v44 = vpack.c.bf16 %v1572_v25, %v1694_v3  ;;  %v1696_v47 = vsel %vm1515_vm1, 0.0, %v1571_v11  ;;  %v1257_v10 = vand.u32 15, %v757_v37  ;;  %v1569_v58 = vsel %vm1561_vm3, %v1552_v51, %v1553_v50  ;;  %v3758_v3 = vld [vmem:[#allocation8 + $0x40] sm:$0xff]  }
 0x137   : > { %v5148_v34 = vpack.c.bf16 %v1570_v29, %v1696_v47  ;;  %v1568_v22 = vsel %vm1561_vm3, %v1553_v50, %v1554_v14  ;;  %v1271_v9 = vand.u32 15, %v759_v18  ;;  %v1555_v28 = vrot.slane %v4918_v4, 7  ;;  %v3623_v50 = vld [vmem:[#allocation8 + $0x70] sm:$0xff]  }
 0x138   : > { %vm1517_vm2 = vcmp.eq.s32.totalorder %v1257_v10, 0  ;;  %v1556_v35 = vrot.slane %v5010_v17, 7  ;;  %v761_v57 = vadd.s32 256, %v4304_v2  ;;  %v1557_v24 = vrot.slane %v5027_v40, 7 }
 0x139   : > { %v1698_v20 = vsel %vm1517_vm2, 0.0, %v1569_v58  ;;  %vm1519_vm4 = vcmp.eq.s32.totalorder %v1271_v9, 0  ;;  %v1567_v54 = vsel %vm1561_vm3, %v1554_v14, %v1555_v28  ;;  %v1558_v36 = vrot.slane %v5036_v6, 7  ;;  %v3624_v58 = vld [vmem:[#allocation8 + $0x78] sm:$0xff]  }
 0x13a   : > { %v5159_v19 = vpack.c.bf16 %v1568_v22, %v1698_v20  ;;  %v1566_v61 = vsel %vm1561_vm3, %v1555_v28, %v1556_v35  ;;  %v1700_v4 = vsel %vm1519_vm4, 0.0, %v1567_v54  ;;  %v1285_v33 = vand.u32 15, %v761_v57  ;;  %v3759_v22 = vld [vmem:[#allocation8 + $0x48] sm:$0xff]   ;;  %v3760_v57 = vld [vmem:[#allocation8 + $0x50] sm:$0xff]  }
 0x13b   : > { %v5163_v27 = vpack.c.bf16 %v1566_v61, %v1700_v4  ;;  %v1564_v17 = vsel %vm1561_vm3, %v1557_v24, %v1558_v36  ;;  %v1565_v40 = vsel %vm1561_vm3, %v1556_v35, %v1557_v24  ;;  %v763_v16 = vadd.s32 272, %v4304_v2  ;;  %v3625_v35 = vld [vmem:[#allocation8 + $0x80] sm:$0xff]   ;;  %v3761_v61 = vld [vmem:[#allocation8 + $0x58] sm:$0xff]  }
 0x13c   : > { %vm1521_vm5 = vcmp.eq.s32.totalorder %v1285_v33, 0  ;;  %v1563_v6 = vsel %vm1561_vm3, %v1558_v36, %v4310_v7  ;;  %v1061_v38 = vand.u32 15, %v4304_v2  ;;  %vm2085_vm8 = vcmask 261120   ;;  %v3626_v36 = vld [vmem:[#allocation8 + $0x88] sm:$0xff]  }
 0x13d   : > { %v1702_v32 = vsel %vm1521_vm5, 0.0, %v1565_v40  ;;  %v1299_v15 = vand.u32 15, %v763_v16  ;;  %vm2140_vm3 = vcmask 523264   ;;  %vm2238_vm9 = vcmask 785408  }
 0x13e   : > { %v5173_v31 = vpack.c.bf16 %v1564_v17, %v1702_v32  ;;  %vm1489_vm7 = vcmp.eq.s32.totalorder %v1061_v38, 0 }
 0x13f   : > { %vm1523_vm6 = vcmp.eq.s32.totalorder %v1299_v15, 0  ;;  %v1670_v26 = vsel %vm1489_vm7, 0.0, %v4310_v7 }
 0x140   : > { %v1704_v55 = vsel %vm1523_vm6, 0.0, %v1563_v6  ;;  %v1923_v41 = vpack.c.bf16 %v4310_v7, %v1670_v26 }
 0x141   : > { %v5176_v56 = vpack.c.bf16 %v4310_v7, %v1704_v55 }
 0x142   : > { %v2088_v0 = vsel %vm2085_vm8, %v1923_v41, %v1996_v48 }
 0x14a   : > { %v2000_v21 = vpop.permute.xlu1 %1999 }
 0x14b   : > { %v2094_v7 = vsel %vm2085_vm8, %v5000_v13, %v2000_v21  ;;  %v3757_v13 = vld [vmem:[#allocation8 + $0x60] sm:$0xff]  }
 0x14c   : > { %v1998_v52 = vpop.permute.xlu0 %1997 }
 0x14d   : > { %v2091_v39 = vsel %vm2085_vm8, %v5012_v53, %v1998_v52  ;;  %v3755_v53 = vld [vmem:[#allocation8 + $0x30] sm:$0xff]  }
 0x14f   : > { %v2050_v60 = vpop.permute.xlu1 %2049 }
 0x150   : > { %v2052_v63 = vpop.permute.xlu0 %2051  ;;  %v2142_v2 = vsel %vm2140_vm3, %v2088_v0, %v2050_v60 }
 0x151   : > { %3307 = vmatprep.mubr.msk.bf16.mxu1 %vm2238_vm9, %v2142_v2  ;;  %v2144_v43 = vsel %vm2140_vm3, %v2091_v39, %v2052_v63 }
 0x152   : > { %3351 = vmatprep.mubr.msk.bf16.mxu0 %vm2238_vm9, %v2144_v43  ;;  %3308 = vmatmul.mubr.msk.bf16.vlgmr.msra.gmra.mrb[0].mxu1 %vm2238_vm9, %v2144_v43 }
 0x153   : > { %v2054_v23 = vpop.permute.xlu1 %2053  ;;  %3433 = vmatpush3.bf16.msra.mxu1 %v3755_v53 }
 0x154   : > { %v5192_v51 = vsel %vm2140_vm3, %v2094_v7, %v2054_v23  ;;  %v2002_v25 = vpop.permute.xlu0 %2001  ;;  %3428 = vmatprep.subr.bf16.mxu1 %v3756_v42 }
 0x155   : > { %3311 = vmatprep.mubr.msk.bf16.mxu1 %vm2238_vm9, %v5192_v51  ;;  %3352 = vmatmul.mubr.msk.bf16.vlgmr.msra.gmra.mrb[0].mxu0 %vm2238_vm9, %v5192_v51  ;;  %v2097_v11 = vsel %vm2085_vm8, %v5014_v49, %v2002_v25 }
 0x156   : > { %3384 = vmatpush3.bf16.msra.mxu0 %v3757_v13 }
 0x157   : > { %v2004_v29 = vpop.permute.xlu1 %2003  ;;  %3385 = vmatprep.subr.bf16.mxu0 %v3622_v12  ;;  %3434 = vmatpush3.bf16.msra.mxu1 %v3756_v42 }
 0x158   : > { %v2056_v37 = vpop.permute.xlu0 %2055  ;;  %3429 = vmatprep.subr.bf16.mxu1 %v3758_v3  ;;  %v2100_v49 = vsel %vm2085_vm8, %v5038_v30, %v2004_v29 }
 0x159   : > { %v5201_v14 = vsel %vm2140_vm3, %v2097_v11, %v2056_v37 }
 0x15a   : > { %3355 = vmatprep.mubr.msk.bf16.mxu0 %vm2238_vm9, %v5201_v14  ;;  %3312 = vmatmul.mubr.msk.bf16.gmra.mrb[4].mxu1 %vm2238_vm9, %v5201_v14 }
 0x15b   : > { %v2058_v18 = vpop.permute.xlu1 %2057  ;;  %3386 = vmatpush3.bf16.msra.mxu0 %v3622_v12  ;;  %3435 = vmatpush3.bf16.msra.mxu1 %v3758_v3 }
 0x15c   : > { %v2150_v47 = vsel %vm2140_vm3, %v2100_v49, %v2058_v18  ;;  %v2006_v10 = vpop.permute.xlu0 %2005  ;;  %3387 = vmatprep.subr.bf16.mxu0 %v3623_v50  ;;  %3430 = vmatprep.subr.bf16.mxu1 %v3759_v22 }
 0x15d   : > { %3315 = vmatprep.mubr.msk.bf16.mxu1 %vm2238_vm9, %v2150_v47  ;;  %3356 = vmatmul.mubr.msk.bf16.gmra.mrb[4].mxu0 %vm2238_vm9, %v2150_v47  ;;  %v2103_v9 = vsel %vm2085_vm8, %v5052_v59, %v2006_v10 }
 0x15f   : > { %v2008_v28 = vpop.permute.xlu1 %2007  ;;  %3388 = vmatpush3.bf16.msra.mxu0 %v3623_v50  ;;  %3436 = vmatpush3.bf16.msra.mxu1 %v3759_v22 }
 0x160   : > { %v2060_v30 = vpop.permute.xlu0 %2059  ;;  %3389 = vmatprep.subr.bf16.mxu0 %v3624_v58  ;;  %3431 = vmatprep.subr.bf16.mxu1 %v3760_v57  ;;  %v2106_v20 = vsel %vm2085_vm8, %v5081_v46, %v2008_v28 }
 0x161   : > { %v2152_v24 = vsel %vm2140_vm3, %v2103_v9, %v2060_v30 }
 0x162   : > { %3359 = vmatprep.mubr.msk.bf16.mxu0 %vm2238_vm9, %v2152_v24  ;;  %3316 = vmatmul.mubr.msk.bf16.gmra.mrb[8].mxu1 %vm2238_vm9, %v2152_v24 }
 0x163   : > { %v2062_v54 = vpop.permute.xlu1 %2061  ;;  %3390 = vmatpush3.bf16.msra.mxu0 %v3624_v58  ;;  %3437 = vmatpush3.bf16.msra.mxu1 %v3760_v57 }
 0x164   : > { %v2154_v59 = vsel %vm2140_vm3, %v2106_v20, %v2062_v54  ;;  %3391 = vmatprep.subr.bf16.mxu0 %v3625_v35  ;;  %3432 = vmatprep.subr.bf16.mxu1 %v3761_v61 }
 0x165   : > { %v2010_v4 = vpop.permute.xlu0 %2009  ;;  %3319 = vmatprep.mubr.msk.bf16.mxu1 %vm2238_vm9, %v2154_v59  ;;  %3360 = vmatmul.mubr.msk.bf16.gmra.mrb[8].mxu0 %vm2238_vm9, %v2154_v59 }
 0x166   : > { %v2109_v46 = vsel %vm2085_vm8, %v5098_v5, %v2010_v4 }
 0x167   : > { %3392 = vmatpush3.bf16.msra.mxu0 %v3625_v35  ;;  %3438 = vmatpush3.bf16.msra.mxu1 %v3761_v61 }
 0x168   : > { %3393 = vmatprep.subr.bf16.mxu0 %v3626_v36  ;;  %v2012_v40 = vpop.permute.xlu1 %2011 }
 0x169   : > { %v2112_v6 = vsel %vm2085_vm8, %v5104_v62, %v2012_v40 }
 0x16b   : > { %v2064_v33 = vpop.permute.xlu0 %2063  ;;  %3394 = vmatpush3.bf16.msra.mxu0 %v3626_v36 }
 0x16c   : > { %v2156_v17 = vsel %vm2140_vm3, %v2109_v46, %v2064_v33 }
 0x16d   : > { %3363 = vmatprep.mubr.msk.bf16.mxu0 %vm2238_vm9, %v2156_v17  ;;  %3320 = vmatmul.mubr.msk.bf16.gmra.mrb[12].mxu1 %vm2238_vm9, %v2156_v17 }
 0x176   : > { %v2014_v16 = vpop.permute.xlu0 %2013 }
 0x177   : > { %v2066_v32 = vpop.permute.xlu1 %2065  ;;  %v2115_v5 = vsel %vm2085_vm8, %v5111_v1, %v2014_v16 }
 0x178   : > { %v2158_v15 = vsel %vm2140_vm3, %v2112_v6, %v2066_v32 }
 0x179   : > { %3323 = vmatprep.mubr.msk.bf16.mxu1 %vm2238_vm9, %v2158_v15  ;;  %3364 = vmatmul.mubr.msk.bf16.gmra.mrb[12].mxu0 %vm2238_vm9, %v2158_v15 }
 0x17a   : > { %3395 = vmatprep.mubr.msk.bf16.mxu0 %vm2238_vm9, %v5192_v51  ;;  %v2016_v55 = vpop.permute.xlu0 %2015 }
 0x17b   : > { %v2068_v38 = vpop.permute.xlu1 %2067  ;;  %v2118_v62 = vsel %vm2085_vm8, %v5120_v45, %v2016_v55 }
 0x17c   : > { %v2160_v48 = vsel %vm2140_vm3, %v2115_v5, %v2068_v38 }
 0x17d   : > { %3324 = vmatmul.mubr.msk.bf16.gmra.mrb[16].mxu1 %vm2238_vm9, %v2160_v48 }
 0x17e   : > { %v2070_v26 = vpop.permute.xlu0 %2069 }
 0x17f   : > { %v2018_v21 = vpop.permute.xlu1 %2017  ;;  %v2162_v41 = vsel %vm2140_vm3, %v2118_v62, %v2070_v26 }
 0x180   : > { %3327 = vmatprep.mubr.msk.bf16.mxu1 %vm2238_vm9, %v2162_v41  ;;  %v2121_v1 = vsel %vm2085_vm8, %v5132_v8, %v2018_v21 }
 0x181   : > { %3396 = vmatmul.mubr.msk.bf16.vlgmr.msra.gmra.mrb[0].mxu0 %vm2238_vm9, %v5201_v14 }
 0x182   : > { %3399 = vmatprep.mubr.msk.bf16.mxu0 %vm2238_vm9, %v2150_v47  ;;  %v2020_v52 = vpop.permute.xlu0 %2019 }
 0x183   : > { %v2072_v39 = vpop.permute.xlu1 %2071  ;;  %v2124_v0 = vsel %vm2085_vm8, %v5144_v44, %v2020_v52 }
 0x184   : > { %v2164_v45 = vsel %vm2140_vm3, %v2121_v1, %v2072_v39 }
 0x185   : > { %3328 = vmatmul.mubr.msk.bf16.gmra.mrb[20].mxu1 %vm2238_vm9, %v2164_v45 }
 0x186   : > { %v2074_v60 = vpop.permute.xlu0 %2073 }
 0x187   : > { %v2022_v63 = vpop.permute.xlu1 %2021  ;;  %v2166_v2 = vsel %vm2140_vm3, %v2124_v0, %v2074_v60 }
 0x188   : > { %3331 = vmatprep.mubr.msk.bf16.mxu1 %vm2238_vm9, %v2166_v2  ;;  %v2127_v8 = vsel %vm2085_vm8, %v5148_v34, %v2022_v63 }
 0x189   : > { %3400 = vmatmul.mubr.msk.bf16.gmra.mrb[4].mxu0 %vm2238_vm9, %v2152_v24 }
 0x18a   : > { %3403 = vmatprep.mubr.msk.bf16.mxu0 %vm2238_vm9, %v2154_v59  ;;  %v2024_v43 = vpop.permute.xlu0 %2023  ;;  %v5293_v59 = vld [vmem:[#allocation10] ss:$0 sm:$0xff] }
 0x18b   : > { %v2076_v7 = vpop.permute.xlu1 %2075  ;;  %v2130_v44 = vsel %vm2085_vm8, %v5159_v19, %v2024_v43 }
 0x18c   : > { %v2168_v23 = vsel %vm2140_vm3, %v2127_v8, %v2076_v7 }
 0x18d   : > { %3332 = vmatmul.mubr.msk.bf16.gmra.mrb[24].mxu1 %vm2238_vm9, %v2168_v23 }
 0x18e   : > { %v2078_v53 = vpop.permute.xlu0 %2077 }
 0x18f   : > { %v2170_v12 = vsel %vm2140_vm3, %v2130_v44, %v2078_v53 }
 0x190   : > { %v2026_v51 = vpop.permute.xlu1 %2025  ;;  %3335 = vmatprep.mubr.msk.bf16.mxu1 %vm2238_vm9, %v2170_v12 }
 0x191   : > { %3404 = vmatmul.mubr.msk.bf16.gmra.mrb[8].mxu0 %vm2238_vm9, %v2156_v17  ;;  %v2133_v34 = vsel %vm2085_vm8, %v5163_v27, %v2026_v51 }
 0x192   : > { %3407 = vmatprep.mubr.msk.bf16.mxu0 %vm2238_vm9, %v2158_v15 }
 0x194   : > { %v2028_v19 = vpop.permute.xlu0 %2027 }
 0x195   : > { %v2136_v27 = vsel %vm2085_vm8, %v5173_v31, %v2028_v19 }
 0x197   : > { %v2080_v25 = vpop.permute.xlu1 %2079 }
 0x198   : > { %v2172_v42 = vsel %vm2140_vm3, %v2133_v34, %v2080_v25 }
 0x199   : > { %3336 = vmatmul.mubr.msk.bf16.gmra.mrb[28].mxu1 %vm2238_vm9, %v2172_v42  ;;  %3408 = vmatmul.mubr.msk.bf16.gmra.mrb[12].mxu0 %vm2238_vm9, %v2160_v48  ;;  %v2082_v11 = vpop.permute.xlu0 %2081 }
 0x19a   : > { %3367 = vmatprep.mubr.msk.bf16.mxu1 %vm2238_vm9, %v2160_v48  ;;  %3411 = vmatprep.mubr.msk.bf16.mxu0 %vm2238_vm9, %v2162_v41  ;;  %v2174_v29 = vsel %vm2140_vm3, %v2136_v27, %v2082_v11 }
 0x19c   : > { %v2030_v13 = vpop.permute.xlu1 %2029 }
 0x19d   : > { %v2139_v37 = vsel %vm2085_vm8, %v5176_v56, %v2030_v13 }
 0x1a0   : > { %v2084_v50 = vpop.permute.xlu1 %2083 }
 0x1a1   : > { %3368 = vmatmul.mubr.msk.bf16.vlgmr.msra.gmra.mrb[16].mxu1 %vm2238_vm9, %v2162_v41  ;;  %3412 = vmatmul.mubr.msk.bf16.gmra.mrb[16].mxu0 %vm2238_vm9, %v2164_v45  ;;  %v2176_v3 = vsel %vm2140_vm3, %v2139_v37, %v2084_v50 }
 0x1a2   : > { %3371 = vmatprep.mubr.msk.bf16.mxu1 %vm2238_vm9, %v2164_v45  ;;  %3415 = vmatprep.mubr.msk.bf16.mxu0 %vm2238_vm9, %v2166_v2 }
 0x1a9   : > { %3372 = vmatmul.mubr.msk.bf16.gmra.mrb[20].mxu1 %vm2238_vm9, %v2166_v2  ;;  %3416 = vmatmul.mubr.msk.bf16.gmra.mrb[20].mxu0 %vm2238_vm9, %v2168_v23 }
 0x1aa   : > { %3375 = vmatprep.mubr.msk.bf16.mxu1 %vm2238_vm9, %v2168_v23  ;;  %3419 = vmatprep.mubr.msk.bf16.mxu0 %vm2238_vm9, %v2170_v12 }
 0x1b1   : > { %3376 = vmatmul.mubr.msk.bf16.gmra.mrb[24].mxu1 %vm2238_vm9, %v2170_v12  ;;  %3420 = vmatmul.mubr.msk.bf16.gmra.mrb[24].mxu0 %vm2238_vm9, %v2172_v42 }
 0x1b2   : > { %3379 = vmatprep.mubr.msk.bf16.mxu1 %vm2238_vm9, %v2172_v42  ;;  %3423 = vmatprep.mubr.msk.bf16.mxu0 %vm2238_vm9, %v2174_v29 }
 0x1b9   : > { %3380 = vmatmul.mubr.msk.bf16.gmra.mrb[28].mxu1 %vm2238_vm9, %v2174_v29  ;;  %3424 = vmatmul.mubr.msk.bf16.gmra.mrb[28].mxu0 %vm2238_vm9, %v2176_v3 }
 0x225   : > { %v3309_v31 = vpop.f32.mrb[0].mxu1 }
 0x226   : > { %v2305_v14 = vpop.f32.mrb[1].mxu1 }
 0x227   : > { %v3310_v49 = vpop.f32.mrb[2].mxu1 }
 0x228   : > { %v2308_v18 = vpop.f32.mrb[3].mxu1 }
 0x22d   : > { %v3313_v47 = vpop.f32.mrb[4].mxu1 }
 0x22e   : > { %v2321_v10 = vpop.f32.mrb[5].mxu1 }
 0x22f   : > { %v3314_v58 = vpop.f32.mrb[6].mxu1 }
 0x230   : > { %v2324_v22 = vpop.f32.mrb[7].mxu1 }
 0x235   : > { %v3317_v9 = vpop.f32.mrb[8].mxu1 }
 0x236   : > { %v2337_v28 = vpop.f32.mrb[9].mxu1 }
 0x237   : > { %v3318_v30 = vpop.f32.mrb[10].mxu1 }
 0x238   : > { %v2340_v56 = vpop.f32.mrb[11].mxu1 }
 0x240   : > { %v3321_v35 = vpop.f32.mrb[12].mxu1 }
 0x241   : > { %v2353_v57 = vpop.f32.mrb[13].mxu1 }
 0x242   : > { %v3322_v24 = vpop.f32.mrb[14].mxu1 }
 0x243   : > { %v2356_v20 = vpop.f32.mrb[15].mxu1 }
 0x254   : > { %v3397_v54 = vpop.f32.mrb[0].mxu0 }
 0x255   : > { %v3439_v36 = vadd.f32 %v3397_v54, %v3309_v31  ;;  %v2716_v61 = vpop.f32.mrb[1].mxu0 }
 0x256   : > { %v3440_v4 = vadd.f32 %v2716_v61, %v2305_v14  ;;  %v3398_v46 = vpop.f32.mrb[2].mxu0 }
 0x257   : > { %v2884_v33 = vadd.f32 %v3439_v36, %v5293_v59  ;;  %v3441_v17 = vadd.f32 %v3398_v46, %v3310_v49  ;;  %v2719_v40 = vpop.f32.mrb[3].mxu0 }
 0x258   : > { %v2882_v16 = vadd.f32 %v3440_v4, %v5293_v59  ;;  %v3442_v6 = vadd.f32 %v2719_v40, %v2308_v18 }
 0x259   : > { %2916 = vst.msk [vmem:[%s5297_s20 + $0x10] sm:$0xff] %vm2140_vm3, %v2884_v33  ;;  %v2885_v32 = vadd.f32 %v3441_v17, %v5293_v59 }
 0x25a   : > { %2914 = vst.msk [vmem:[%s5297_s20] sm:$0xff] %vm2140_vm3, %v2882_v16  ;;  %v2883_v15 = vadd.f32 %v3442_v6, %v5293_v59 }
 0x25b   : > { %2917 = vst.msk [vmem:[%s5297_s20 + $0x18] sm:$0xff] %vm2140_vm3, %v2885_v32 }
 0x25c   : > { %2915 = vst.msk [vmem:[%s5297_s20 + $0x8] sm:$0xff] %vm2140_vm3, %v2883_v15  ;;  %v3401_v5 = vpop.f32.mrb[4].mxu0 }
 0x25d   : > { %v3443_v55 = vadd.f32 %v3401_v5, %v3313_v47  ;;  %v2732_v38 = vpop.f32.mrb[5].mxu0 }
 0x25e   : > { %v3444_v48 = vadd.f32 %v2732_v38, %v2321_v10  ;;  %v3402_v62 = vpop.f32.mrb[6].mxu0 }
 0x25f   : > { %v2888_v26 = vadd.f32 %v3443_v55, %v5293_v59  ;;  %v3445_v21 = vadd.f32 %v3402_v62, %v3314_v58  ;;  %v2735_v41 = vpop.f32.mrb[7].mxu0 }
 0x260   : > { %v2886_v1 = vadd.f32 %v3444_v48, %v5293_v59  ;;  %v3446_v52 = vadd.f32 %v2735_v41, %v2324_v22 }
 0x261   : > { %2920 = vst.msk [vmem:[%s5297_s20 + $0x30] sm:$0xff] %vm2140_vm3, %v2888_v26  ;;  %v2889_v39 = vadd.f32 %v3445_v21, %v5293_v59 }
 0x262   : > { %2918 = vst.msk [vmem:[%s5297_s20 + $0x20] sm:$0xff] %vm2140_vm3, %v2886_v1  ;;  %v2887_v45 = vadd.f32 %v3446_v52, %v5293_v59 }
 0x263   : > { %2921 = vst.msk [vmem:[%s5297_s20 + $0x38] sm:$0xff] %vm2140_vm3, %v2889_v39 }
 0x264   : > { %2919 = vst.msk [vmem:[%s5297_s20 + $0x28] sm:$0xff] %vm2140_vm3, %v2887_v45  ;;  %v3405_v0 = vpop.f32.mrb[8].mxu0 }
 0x265   : > { %v3447_v60 = vadd.f32 %v3405_v0, %v3317_v9  ;;  %v2748_v63 = vpop.f32.mrb[9].mxu0 }
 0x266   : > { %v3448_v2 = vadd.f32 %v2748_v63, %v2337_v28  ;;  %v3406_v8 = vpop.f32.mrb[10].mxu0 }
 0x267   : > { %v2892_v43 = vadd.f32 %v3447_v60, %v5293_v59  ;;  %v3449_v7 = vadd.f32 %v3406_v8, %v3318_v30  ;;  %v2751_v23 = vpop.f32.mrb[11].mxu0 }
 0x268   : > { %v2890_v44 = vadd.f32 %v3448_v2, %v5293_v59  ;;  %v3450_v53 = vadd.f32 %v2751_v23, %v2340_v56 }
 0x269   : > { %2924 = vst.msk [vmem:[%s5297_s20 + $0x50] sm:$0xff] %vm2140_vm3, %v2892_v43  ;;  %v2893_v12 = vadd.f32 %v3449_v7, %v5293_v59 }
 0x26a   : > { %2922 = vst.msk [vmem:[%s5297_s20 + $0x40] sm:$0xff] %vm2140_vm3, %v2890_v44  ;;  %v2891_v51 = vadd.f32 %v3450_v53, %v5293_v59 }
 0x26b   : > { %2925 = vst.msk [vmem:[%s5297_s20 + $0x58] sm:$0xff] %vm2140_vm3, %v2893_v12 }
 0x26c   : > { %2923 = vst.msk [vmem:[%s5297_s20 + $0x48] sm:$0xff] %vm2140_vm3, %v2891_v51  ;;  %v3409_v34 = vpop.f32.mrb[12].mxu0 }
 0x26d   : > { %v3451_v25 = vadd.f32 %v3409_v34, %v3321_v35  ;;  %v2764_v42 = vpop.f32.mrb[13].mxu0 }
 0x26e   : > { %v3452_v19 = vadd.f32 %v2764_v42, %v2353_v57  ;;  %v3410_v27 = vpop.f32.mrb[14].mxu0 }
 0x26f   : > { %v2896_v11 = vadd.f32 %v3451_v25, %v5293_v59  ;;  %v3453_v13 = vadd.f32 %v3410_v27, %v3322_v24  ;;  %v2767_v29 = vpop.f32.mrb[15].mxu0 }
 0x270   : > { %v2894_v37 = vadd.f32 %v3452_v19, %v5293_v59  ;;  %v3454_v50 = vadd.f32 %v2767_v29, %v2356_v20 }
 0x271   : > { %2928 = vst.msk [vmem:[%s5297_s20 + $0x70] sm:$0xff] %vm2140_vm3, %v2896_v11  ;;  %v2897_v3 = vadd.f32 %v3453_v13, %v5293_v59 }
 0x272   : > { %2926 = vst.msk [vmem:[%s5297_s20 + $0x60] sm:$0xff] %vm2140_vm3, %v2894_v37  ;;  %v2895_v31 = vadd.f32 %v3454_v50, %v5293_v59 }
 0x273   : > { %2929 = vst.msk [vmem:[%s5297_s20 + $0x78] sm:$0xff] %vm2140_vm3, %v2897_v3 }
 0x274   : > { %v3369_v14 = vpop.f32.mrb[16].mxu1  ;;  %2927 = vst.msk [vmem:[%s5297_s20 + $0x68] sm:$0xff] %vm2140_vm3, %v2895_v31  ;;  %v3413_v18 = vpop.f32.mrb[16].mxu0 }
 0x275   : > { %v2568_v49 = vpop.f32.mrb[17].mxu1  ;;  %v3455_v10 = vadd.f32 %v3413_v18, %v3369_v14  ;;  %v2780_v58 = vpop.f32.mrb[17].mxu0 }
 0x276   : > { %v3370_v47 = vpop.f32.mrb[18].mxu1  ;;  %v3456_v9 = vadd.f32 %v2780_v58, %v2568_v49  ;;  %v3414_v28 = vpop.f32.mrb[18].mxu0 }
 0x277   : > { %v2571_v22 = vpop.f32.mrb[19].mxu1  ;;  %v2900_v30 = vadd.f32 %v3455_v10, %v5293_v59  ;;  %v3457_v56 = vadd.f32 %v3414_v28, %v3370_v47  ;;  %v2783_v35 = vpop.f32.mrb[19].mxu0 }
 0x278   : > { %v2898_v57 = vadd.f32 %v3456_v9, %v5293_v59  ;;  %v3458_v24 = vadd.f32 %v2783_v35, %v2571_v22 }
 0x279   : > { %2932 = vst.msk [vmem:[%s5297_s20 + $0x90] sm:$0xff] %vm2140_vm3, %v2900_v30  ;;  %v2901_v20 = vadd.f32 %v3457_v56, %v5293_v59 }
 0x27a   : > { %2930 = vst.msk [vmem:[%s5297_s20 + $0x80] sm:$0xff] %vm2140_vm3, %v2898_v57  ;;  %v2899_v54 = vadd.f32 %v3458_v24, %v5293_v59 }
 0x27b   : > { %2933 = vst.msk [vmem:[%s5297_s20 + $0x98] sm:$0xff] %vm2140_vm3, %v2901_v20 }
 0x27c   : > { %v3373_v36 = vpop.f32.mrb[20].mxu1  ;;  %2931 = vst.msk [vmem:[%s5297_s20 + $0x88] sm:$0xff] %vm2140_vm3, %v2899_v54  ;;  %v3417_v4 = vpop.f32.mrb[20].mxu0 }
 0x27d   : > { %v2584_v61 = vpop.f32.mrb[21].mxu1  ;;  %v3459_v33 = vadd.f32 %v3417_v4, %v3373_v36  ;;  %v2796_v17 = vpop.f32.mrb[21].mxu0 }
 0x27e   : > { %v3374_v46 = vpop.f32.mrb[22].mxu1  ;;  %v3460_v16 = vadd.f32 %v2796_v17, %v2584_v61  ;;  %v3418_v6 = vpop.f32.mrb[22].mxu0 }
 0x27f   : > { %v2587_v40 = vpop.f32.mrb[23].mxu1  ;;  %v2904_v32 = vadd.f32 %v3459_v33, %v5293_v59  ;;  %v3461_v15 = vadd.f32 %v3418_v6, %v3374_v46  ;;  %v2799_v5 = vpop.f32.mrb[23].mxu0 }
 0x280   : > { %v2902_v55 = vadd.f32 %v3460_v16, %v5293_v59  ;;  %v3462_v38 = vadd.f32 %v2799_v5, %v2587_v40 }
 0x281   : > { %2936 = vst.msk [vmem:[%s5297_s20 + $0xb0] sm:$0xff] %vm2140_vm3, %v2904_v32  ;;  %v2905_v48 = vadd.f32 %v3461_v15, %v5293_v59 }
 0x282   : > { %2934 = vst.msk [vmem:[%s5297_s20 + $0xa0] sm:$0xff] %vm2140_vm3, %v2902_v55  ;;  %v2903_v62 = vadd.f32 %v3462_v38, %v5293_v59 }
 0x283   : > { %2937 = vst.msk [vmem:[%s5297_s20 + $0xb8] sm:$0xff] %vm2140_vm3, %v2905_v48 }
 0x284   : > { %v3377_v26 = vpop.f32.mrb[24].mxu1  ;;  %2935 = vst.msk [vmem:[%s5297_s20 + $0xa8] sm:$0xff] %vm2140_vm3, %v2903_v62  ;;  %v3421_v41 = vpop.f32.mrb[24].mxu0 }
 0x285   : > { %v2600_v21 = vpop.f32.mrb[25].mxu1  ;;  %v3463_v52 = vadd.f32 %v3421_v41, %v3377_v26  ;;  %v2812_v39 = vpop.f32.mrb[25].mxu0 }
 0x286   : > { %v3378_v1 = vpop.f32.mrb[26].mxu1  ;;  %v3464_v0 = vadd.f32 %v2812_v39, %v2600_v21  ;;  %v3422_v60 = vpop.f32.mrb[26].mxu0 }
 0x287   : > { %v2603_v45 = vpop.f32.mrb[27].mxu1  ;;  %v2908_v63 = vadd.f32 %v3463_v52, %v5293_v59  ;;  %v3465_v2 = vadd.f32 %v3422_v60, %v3378_v1  ;;  %v2815_v8 = vpop.f32.mrb[27].mxu0 }
 0x288   : > { %v2906_v43 = vadd.f32 %v3464_v0, %v5293_v59  ;;  %v3466_v7 = vadd.f32 %v2815_v8, %v2603_v45 }
 0x289   : > { %2940 = vst.msk [vmem:[%s5297_s20 + $0xd0] sm:$0xff] %vm2140_vm3, %v2908_v63  ;;  %v2909_v23 = vadd.f32 %v3465_v2, %v5293_v59 }
 0x28a   : > { %2938 = vst.msk [vmem:[%s5297_s20 + $0xc0] sm:$0xff] %vm2140_vm3, %v2906_v43  ;;  %v2907_v44 = vadd.f32 %v3466_v7, %v5293_v59 }
 0x28b   : > { %2941 = vst.msk [vmem:[%s5297_s20 + $0xd8] sm:$0xff] %vm2140_vm3, %v2909_v23 }
 0x28c   : > { %v3381_v53 = vpop.f32.mrb[28].mxu1  ;;  %2939 = vst.msk [vmem:[%s5297_s20 + $0xc8] sm:$0xff] %vm2140_vm3, %v2907_v44  ;;  %v3425_v51 = vpop.f32.mrb[28].mxu0 }
 0x28d   : > { %v2616_v12 = vpop.f32.mrb[29].mxu1  ;;  %v3467_v25 = vadd.f32 %v3425_v51, %v3381_v53  ;;  %v2828_v42 = vpop.f32.mrb[29].mxu0 }
 0x28e   : > { %v3382_v34 = vpop.f32.mrb[30].mxu1  ;;  %v3468_v27 = vadd.f32 %v2828_v42, %v2616_v12  ;;  %v3426_v11 = vpop.f32.mrb[30].mxu0 }
 0x28f   : > { %v2619_v19 = vpop.f32.mrb[31].mxu1  ;;  %v2912_v13 = vadd.f32 %v3467_v25, %v5293_v59  ;;  %v3469_v29 = vadd.f32 %v3426_v11, %v3382_v34  ;;  %v2831_v37 = vpop.f32.mrb[31].mxu0 }
 0x290   : > { %v2910_v50 = vadd.f32 %v3468_v27, %v5293_v59  ;;  %v3470_v3 = vadd.f32 %v2831_v37, %v2619_v19 }
 0x291   : > { %2944 = vst.msk [vmem:[%s5297_s20 + $0xf0] sm:$0xff] %vm2140_vm3, %v2912_v13  ;;  %v2913_v31 = vadd.f32 %v3469_v29, %v5293_v59 }
 0x292   : > { %2942 = vst.msk [vmem:[%s5297_s20 + $0xe0] sm:$0xff] %vm2140_vm3, %v2910_v50  ;;  %v2911_v14 = vadd.f32 %v3470_v3, %v5293_v59 }
 0x293   : > { %2945 = vst.msk [vmem:[%s5297_s20 + $0xf8] sm:$0xff] %vm2140_vm3, %v2913_v31 }
 0x294   : > { %2943 = vst.msk [vmem:[%s5297_s20 + $0xe8] sm:$0xff] %vm2140_vm3, %v2911_v14 }
 0x295   : > { %3921 = shalt.err (!%p3918_p8)
}
 0x296   : > { %s3922_s17 = scalar_lea.hbm %s5391_s29, 4096  ;;  %s3926_s28 = scalar_lea.hbm %s5454_s5, 8192 }
 0x297   : > { %p3923_p0 = scmp.ne.s32.totalorder %s5391_s29, %s3922_s17  ;;  %p3927_p7 = scmp.lt.u32.totalorder %s5391_s29, %s5454_s5 }
 0x298   : > { %p3928_p1 = scmp.lt.u32.totalorder %s3926_s28, %s3922_s17  ;;  %p3930_p2 = scmp.lt.u32.totalorder %s3922_s17, %s5391_s29 }
 0x299   : > { %p3924_p5 = pnand %p3923_p0, %p5540_p4 }
 0x29a   : > { %p3929_p9 = por %p3928_p1, %p3927_p7 }
 0x29b   : > { %p3925_p12 = pneg %p3924_p5 }
 0x29c   : > { %p3931_p10 = por %p3930_p2, %p3929_p9 }
 0x29e   : > { %p3932_p3 = pnand %p3931_p10, %p3925_p12 }
 0x2a0   : > { %3935 = shalt.err (!%p3932_p3)
}
 0x2a1   : > { %s4014_s15 = smov 128   ;;  %s4015_s25 = smov 8  }
 0x2a2   : > { %3520 = dma.vmem_to_hbm [thread:$0]  (%p5540_p4), %s5393_s3, 4096, %s5391_s29, %s2947_s21, %s4014_s15, %s4014_s15, %s4015_s25  }
 0x2a3 PF: > { %s5541_s24 = sld [smem:[#allocation17_spill]]  ;;  %s2977_s26 = sand.u32 1, %s3978_s18  }
 0x2a4   : > { %p5542_p11 = scmp.ne.s32.totalorder %s5477_s27, 0  ;;  %s2978_s20 = scalar_lea.sflag [#allocation4], %s2977_s26 }
 0x2a9   : > { %p5543_p13 = scmp.ge.s32.totalorder %s5541_s24, 2 }
 0x2ab   : > { %p3540_p6 = pnand %p5543_p13, %p5542_p11 }
 0x2ad   : > { %3973 = dma.done.wait (!%p3540_p6), %s2978_s20, 4096  }
 0x2ae   : > { %3975 = vsyncadd (!%p3540_p6), %s2978_s20, 4294963200  ;;  %s25_s23 = sadd.s32 1, %s5541_s24   ;;  %s5544_s12 = sld [smem:[#allocation16_spill]] }
 0x2af   : > { %p22_p8 = scmp.ge.s32.totalorder %s25_s23, 4   ;;  %s5545_s20 = sld [smem:[#allocation19_spill]] }
 0x2b0   : > { %s5546_s9 = sld [smem:[#allocation18_spill]]  ;;  %s5547_s18 = smov %s3982_s19 }
 0x2b1   : > { %s5549_s21 = smov %s3994_s22  ;;  %24 = sbr.rel (!%p22_p8) target bundleno = 12 (0xc), region = 119 }
 0x2b4   : > { %s5548_s19 = smov %s5544_s12 }
 0x2b6   : > { %s5550_s22 = smov %s5546_s9 }
 0x2b8   :  { %2983 = vsyncpa [#allocation3], 1 }
 0x2b9   :  { %2985 = vsyncpa [#allocation3 + $0x1], 1 }
 0x2ba   :  { %2986 = vsyncpa [#allocation6], 1 }
 0x2bb   :  { %2988 = vsyncpa [#allocation6 + $0x1], 1 }
 0x2bc   :  { %2989 = vsyncpa [#allocation9], 1 }
 0x2bd   :  { %2990 = vsyncpa [#allocation4], 1 }
 0x2be   :  { %2992 = vsyncpa [#allocation4 + $0x1], 1 }

</bundles_post_ra>
